<compile_context>
chip_gen: v7x
topology: tpu7x:2x2x1
jax: 0.10.0
libtpu: 0.0.40
codegen_flags: <defaults>
</compile_context>

<pallas_src>
import functools
import math

import numpy as np

import jax
import jax.numpy as jnp
from jax.experimental import pallas as pl
from jax.experimental.pallas import tpu as pltpu


# ---------------------------------------------------------------------------
# Fused Pallas kernel (one grid step == one batch sample)
# ---------------------------------------------------------------------------

def _lenet5_kernel(x_ref, m1_ref, b1_ref, ph1_ref, pw1_ref,
                   m2_ref, b2_ref, ph2_ref, pw2_ref,
                   m3_ref, b3_ref, w4_ref, b4_ref, w5_ref, b5_ref,
                   o_ref, p1_scr, p2_scr):
    f32 = jnp.float32
    dot = functools.partial(jnp.dot, preferred_element_type=f32)

    # --- conv1 (1 -> 6, k=5) + ReLU.  rows = oh (28), lanes = ow*6 + oc (168)
    acc = dot(x_ref[0, 0, 0:28, :], m1_ref[0])
    for di in range(1, 5):
        acc = acc + dot(x_ref[0, 0, di:di + 28, :], m1_ref[di])
    c1 = jnp.maximum(acc + b1_ref[...], 0.0)                      # (28, 168)

    # --- pool1: 2x2 average pooling as two averaging matmuls -> (14, 84)
    p1_scr[...] = dot(dot(ph1_ref[...], c1), pw1_ref[...])

    # --- conv2 (6 -> 16, k=5) + ReLU.  rows = oh (10), lanes = ow*16 + oc (160)
    acc = dot(p1_scr[0:10, :], m2_ref[0])
    for di in range(1, 5):
        acc = acc + dot(p1_scr[di:di + 10, :], m2_ref[di])
    c2 = jnp.maximum(acc + b2_ref[...], 0.0)                      # (10, 160)

    # --- pool2 -> (5, 80)
    p2_scr[...] = dot(dot(ph2_ref[...], c2), pw2_ref[...])

    # --- conv3 (16 -> 120, k=5 over the whole 5x5 map) + ReLU -> (1, 120)
    acc = dot(p2_scr[0:1, :], m3_ref[0])
    for di in range(1, 5):
        acc = acc + dot(p2_scr[di:di + 1, :], m3_ref[di])
    a3 = jnp.maximum(acc + b3_ref[...], 0.0)                      # (1, 120)

    # --- fc1 + ReLU -> (1, 84)
    a4 = jnp.maximum(dot(a3, w4_ref[...]) + b4_ref[...], 0.0)

    # --- fc2 -> (1, 10)
    o_ref[0] = (dot(a4, w5_ref[...]) + b5_ref[...]).astype(o_ref.dtype)


def _full_spec(a):
    """BlockSpec covering the whole (small) array, constant across the grid."""
    nd = a.ndim

    def imap(b):
        return (0,) * nd

    return pl.BlockSpec(a.shape, imap)


def lenet5_forward(packed, x):
    """x: (B, 1, 32, 32) float32 NCHW -> (B, 10) float32 logits."""
    assert x.shape[1:] == (1, 32, 32), x.shape
    B = x.shape[0]

    # Advisory cost estimate (actual MXU matmul shapes, per sample).
    flops = B * (5 * 2 * 28 * 32 * 168            # conv1
                 + 2 * 14 * 28 * 168 + 2 * 14 * 168 * 84   # pool1
                 + 5 * 2 * 10 * 84 * 160          # conv2
                 + 2 * 5 * 10 * 160 + 2 * 5 * 160 * 80     # pool2
                 + 5 * 2 * 80 * 120               # conv3
                 + 2 * 120 * 84 + 2 * 84 * 10)    # fc1, fc2
    bytes_accessed = 4 * (int(x.size) + sum(int(a.size) for a in packed) + B * 10)

    in_specs = [pl.BlockSpec((1, 1, 32, 32), lambda b: (b, 0, 0, 0))]
    in_specs += [_full_spec(a) for a in packed]

    out = pl.pallas_call(
        _lenet5_kernel,
        out_shape=jax.ShapeDtypeStruct((B, 1, 10), jnp.float32),
        grid_spec=pltpu.PrefetchScalarGridSpec(
            num_scalar_prefetch=0,
            grid=(B,),
            in_specs=in_specs,
            out_specs=pl.BlockSpec((1, 1, 10), lambda b: (b, 0, 0)),
            scratch_shapes=[pltpu.VMEM((14, 84), jnp.float32),   # pool1 output
                            pltpu.VMEM((5, 80), jnp.float32)],   # pool2 output
        ),
        compiler_params=pltpu.CompilerParams(dimension_semantics=("parallel",)),
        cost_estimate=pl.CostEstimate(flops=int(flops), transcendentals=0,
                                      bytes_accessed=int(bytes_accessed)),
    )(x, *packed)
    return out.reshape(B, 10)


# ---------------------------------------------------------------------------
# Host-side, one-time parameter repacking
# ---------------------------------------------------------------------------

def pack_params(params):
    """Repack PyTorch-layout LeNet5 params into the banded-matmul operands."""
    def np32(a):
        return np.asarray(jax.device_get(a), dtype=np.float32)

    w1, b1 = np32(params["conv1"][0]), np32(params["conv1"][1])   # (6,1,5,5)
    w2, b2 = np32(params["conv2"][0]), np32(params["conv2"][1])   # (16,6,5,5)
    w3, b3 = np32(params["conv3"][0]), np32(params["conv3"][1])   # (120,16,5,5)
    fw1, fb1 = np32(params["fc1"][0]), np32(params["fc1"][1])     # (84,120)
    fw2, fb2 = np32(params["fc2"][0]), np32(params["fc2"][1])     # (10,84)

    k = 5

    def conv_band(w, w_in, ow_out):
        # w: (OC, C, k, k) -> band (k, w_in*C, ow_out*OC) with
        #   band[di, w'*C + c, ow*OC + oc] = w[oc, c, di, w' - ow]  (0<=w'-ow<k)
        oc_n, c_n = w.shape[0], w.shape[1]
        band = np.zeros((k, w_in, c_n, ow_out, oc_n), np.float32)
        for di in range(k):
            for dj in range(k):
                wt = w[:, :, di, dj].T          # (C, OC)
                for ow in range(ow_out):
                    band[di, ow + dj, :, ow, :] = wt
        return band.reshape(k, w_in * c_n, ow_out * oc_n)

    def pool_rows(h):
        m = np.zeros((h // 2, h), np.float32)
        for p in range(h // 2):
            m[p, 2 * p] = 0.5
            m[p, 2 * p + 1] = 0.5
        return m

    def pool_cols(w, c):
        m = np.zeros((w * c, (w // 2) * c), np.float32)
        for p in range(w // 2):
            for cc in range(c):
                m[(2 * p) * c + cc, p * c + cc] = 0.5
                m[(2 * p + 1) * c + cc, p * c + cc] = 0.5
        return m

    packed = (
        conv_band(w1, 32, 28), np.tile(b1, 28)[None, :],          # (5,32,168),(1,168)
        pool_rows(28), pool_cols(28, 6),                          # (14,28),(168,84)
        conv_band(w2, 14, 10), np.tile(b2, 10)[None, :],          # (5,84,160),(1,160)
        pool_rows(10), pool_cols(10, 16),                         # (5,10),(160,80)
        conv_band(w3, 5, 1), b3[None, :],                         # (5,80,120),(1,120)
        np.ascontiguousarray(fw1.T), fb1[None, :],                # (120,84),(1,84)
        np.ascontiguousarray(fw2.T), fb2[None, :],                # (84,10),(1,10)
    )
    return tuple(jnp.asarray(a) for a in packed)


# ---------------------------------------------------------------------------
# LeNet5 parameters (deterministic, PyTorch-default-style uniform init)
# ---------------------------------------------------------------------------

def init_params(key):
    def conv_init(k, oc, ic, ks):
        bound = 1.0 / math.sqrt(ic * ks * ks)
        kw, kb = jax.random.split(k)
        w = jax.random.uniform(kw, (oc, ic, ks, ks), jnp.float32, -bound, bound)
        b = jax.random.uniform(kb, (oc,), jnp.float32, -bound, bound)
        return w, b

    def fc_init(k, out_f, in_f):
        bound = 1.0 / math.sqrt(in_f)
        kw, kb = jax.random.split(k)
        w = jax.random.uniform(kw, (out_f, in_f), jnp.float32, -bound, bound)
        b = jax.random.uniform(kb, (out_f,), jnp.float32, -bound, bound)
        return w, b

    k1, k2, k3, k4, k5 = jax.random.split(key, 5)
    return {
        "conv1": conv_init(k1, 6, 1, 5),
        "conv2": conv_init(k2, 16, 6, 5),
        "conv3": conv_init(k3, 120, 16, 5),
        "fc1": fc_init(k4, 84, 120),
        "fc2": fc_init(k5, 10, 84),
    }


# ---------------------------------------------------------------------------
# Pure-JAX reference (for correctness sanity check only)
# ---------------------------------------------------------------------------

def lenet5_reference(params, x):
    def conv(x, wb):
        w, b = wb
        y = jax.lax.conv_general_dilated(
            x, w, window_strides=(1, 1), padding="VALID",
            dimension_numbers=("NCHW", "OIHW", "NCHW"),
            precision=jax.lax.Precision.HIGHEST)
        return y + b.reshape(1, -1, 1, 1)

    def pool(x):
        B, C, H, W = x.shape
        return x.reshape(B, C, H // 2, 2, W // 2, 2).mean(axis=(3, 5))

    y = pool(jax.nn.relu(conv(x, params["conv1"])))
    y = pool(jax.nn.relu(conv(y, params["conv2"])))
    y = jax.nn.relu(conv(y, params["conv3"]))
    y = y.reshape(-1, 120)
    w, b = params["fc1"]
    y = jax.nn.relu(y @ w.T + b)
    w, b = params["fc2"]
    return y @ w.T + b


if __name__ == "__main__":
    key = jax.random.PRNGKey(0)
    kp, kx = jax.random.split(key)
    params = init_params(kp)
    # LeNet5 requires 32x32 single-channel input (conv3 consumes the 5x5 map).
    x = jax.random.normal(kx, (2, 1, 32, 32), jnp.float32)

    packed = pack_params(params)                 # host-side, once
    fwd = jax.jit(lenet5_forward)
    out = jax.block_until_ready(fwd(packed, x))
    assert out.shape == (2, 10) and out.dtype == jnp.float32

    # Sanity check against pure-JAX reference (loose tol for MXU f32 passes).
    ref = jax.block_until_ready(lenet5_reference(params, x))
    np.testing.assert_allclose(np.asarray(out), np.asarray(ref),
                               rtol=3e-2, atol=3e-3)

    print("KERNEL_OK")
</pallas_src>

<mosaic_0001>
module attributes {stable_mosaic.version = 11 : i64} {
  func.func @_lenet5_kernel(%arg0: i32, %arg1: memref<1x1x32x32xf32, #tpu.memory_space<vmem>>, %arg2: memref<5x32x168xf32, #tpu.memory_space<vmem>>, %arg3: memref<1x168xf32, #tpu.memory_space<vmem>>, %arg4: memref<14x28xf32, #tpu.memory_space<vmem>>, %arg5: memref<168x84xf32, #tpu.memory_space<vmem>>, %arg6: memref<5x84x160xf32, #tpu.memory_space<vmem>>, %arg7: memref<1x160xf32, #tpu.memory_space<vmem>>, %arg8: memref<5x10xf32, #tpu.memory_space<vmem>>, %arg9: memref<160x80xf32, #tpu.memory_space<vmem>>, %arg10: memref<5x80x120xf32, #tpu.memory_space<vmem>>, %arg11: memref<1x120xf32, #tpu.memory_space<vmem>>, %arg12: memref<120x84xf32, #tpu.memory_space<vmem>>, %arg13: memref<1x84xf32, #tpu.memory_space<vmem>>, %arg14: memref<84x10xf32, #tpu.memory_space<vmem>>, %arg15: memref<1x10xf32, #tpu.memory_space<vmem>>, %arg16: memref<1x1x10xf32, #tpu.memory_space<vmem>>, %arg17: memref<14x84xf32, #tpu.memory_space<vmem>>, %arg18: memref<5x80xf32, #tpu.memory_space<vmem>>) attributes {dimension_semantics = [#tpu.dimension_semantics<parallel>], iteration_bounds = array<i64: 2>, scalar_prefetch = 0 : i64, scratch_operands = 2 : i64, tpu.core_type = #tpu.core_type<tc>, window_params = [{transform_indices = @transform_0, window_bounds = array<i64: 1, 1, 32, 32>}, {pipeline_mode = #tpu.pipeline_mode<synchronous>, transform_indices = @transform_1, window_bounds = array<i64: 5, 32, 168>}, {pipeline_mode = #tpu.pipeline_mode<synchronous>, transform_indices = @transform_2, window_bounds = array<i64: 1, 168>}, {pipeline_mode = #tpu.pipeline_mode<synchronous>, transform_indices = @transform_3, window_bounds = array<i64: 14, 28>}, {pipeline_mode = #tpu.pipeline_mode<synchronous>, transform_indices = @transform_4, window_bounds = array<i64: 168, 84>}, {pipeline_mode = #tpu.pipeline_mode<synchronous>, transform_indices = @transform_5, window_bounds = array<i64: 5, 84, 160>}, {pipeline_mode = #tpu.pipeline_mode<synchronous>, transform_indices = @transform_6, window_bounds = array<i64: 1, 160>}, {pipeline_mode = #tpu.pipeline_mode<synchronous>, transform_indices = @transform_7, window_bounds = array<i64: 5, 10>}, {pipeline_mode = #tpu.pipeline_mode<synchronous>, transform_indices = @transform_8, window_bounds = array<i64: 160, 80>}, {pipeline_mode = #tpu.pipeline_mode<synchronous>, transform_indices = @transform_9, window_bounds = array<i64: 5, 80, 120>}, {pipeline_mode = #tpu.pipeline_mode<synchronous>, transform_indices = @transform_10, window_bounds = array<i64: 1, 120>}, {pipeline_mode = #tpu.pipeline_mode<synchronous>, transform_indices = @transform_11, window_bounds = array<i64: 120, 84>}, {pipeline_mode = #tpu.pipeline_mode<synchronous>, transform_indices = @transform_12, window_bounds = array<i64: 1, 84>}, {pipeline_mode = #tpu.pipeline_mode<synchronous>, transform_indices = @transform_13, window_bounds = array<i64: 84, 10>}, {pipeline_mode = #tpu.pipeline_mode<synchronous>, transform_indices = @transform_14, window_bounds = array<i64: 1, 10>}, {transform_indices = @transform_15, window_bounds = array<i64: 1, 1, 10>}]} {
    %c0 = arith.constant 0 : index
    %c0_0 = arith.constant 0 : index
    %c0_1 = arith.constant 0 : index
    %c0_2 = arith.constant 0 : index
    %0 = vector.load %arg1[%c0, %c0_0, %c0_1, %c0_2] : memref<1x1x32x32xf32, #tpu.memory_space<vmem>>, vector<1x1x28x32xf32>
    %1 = vector.shape_cast %0 : vector<1x1x28x32xf32> to vector<28x32xf32>
    %c0_3 = arith.constant 0 : index
    %c0_4 = arith.constant 0 : index
    %c0_5 = arith.constant 0 : index
    %2 = vector.load %arg2[%c0_3, %c0_4, %c0_5] : memref<5x32x168xf32, #tpu.memory_space<vmem>>, vector<1x32x168xf32>
    %3 = vector.shape_cast %2 : vector<1x32x168xf32> to vector<32x168xf32>
    %cst = arith.constant dense<0.000000e+00> : vector<28x168xf32>
    %4 = tpu.matmul %1, %3, %cst {dimension_numbers = #tpu.dot_dimension_numbers<[1], [0], [0], [1], [0, 0, 1, 1], [], []>} : vector<28x32xf32>, vector<32x168xf32>, vector<28x168xf32> -> vector<28x168xf32>
    %c0_6 = arith.constant 0 : index
    %c0_7 = arith.constant 0 : index
    %c1 = arith.constant 1 : index
    %c0_8 = arith.constant 0 : index
    %5 = vector.load %arg1[%c0_6, %c0_7, %c1, %c0_8] : memref<1x1x32x32xf32, #tpu.memory_space<vmem>>, vector<1x1x28x32xf32>
    %6 = vector.shape_cast %5 : vector<1x1x28x32xf32> to vector<28x32xf32>
    %c1_9 = arith.constant 1 : index
    %c0_10 = arith.constant 0 : index
    %c0_11 = arith.constant 0 : index
    %7 = vector.load %arg2[%c1_9, %c0_10, %c0_11] : memref<5x32x168xf32, #tpu.memory_space<vmem>>, vector<1x32x168xf32>
    %8 = vector.shape_cast %7 : vector<1x32x168xf32> to vector<32x168xf32>
    %cst_12 = arith.constant dense<0.000000e+00> : vector<28x168xf32>
    %9 = tpu.matmul %6, %8, %cst_12 {dimension_numbers = #tpu.dot_dimension_numbers<[1], [0], [0], [1], [0, 0, 1, 1], [], []>} : vector<28x32xf32>, vector<32x168xf32>, vector<28x168xf32> -> vector<28x168xf32>
    %10 = arith.addf %4, %9 : vector<28x168xf32>
    %c0_13 = arith.constant 0 : index
    %c0_14 = arith.constant 0 : index
    %c2 = arith.constant 2 : index
    %c0_15 = arith.constant 0 : index
    %11 = vector.load %arg1[%c0_13, %c0_14, %c2, %c0_15] : memref<1x1x32x32xf32, #tpu.memory_space<vmem>>, vector<1x1x28x32xf32>
    %12 = vector.shape_cast %11 : vector<1x1x28x32xf32> to vector<28x32xf32>
    %c2_16 = arith.constant 2 : index
    %c0_17 = arith.constant 0 : index
    %c0_18 = arith.constant 0 : index
    %13 = vector.load %arg2[%c2_16, %c0_17, %c0_18] : memref<5x32x168xf32, #tpu.memory_space<vmem>>, vector<1x32x168xf32>
    %14 = vector.shape_cast %13 : vector<1x32x168xf32> to vector<32x168xf32>
    %cst_19 = arith.constant dense<0.000000e+00> : vector<28x168xf32>
    %15 = tpu.matmul %12, %14, %cst_19 {dimension_numbers = #tpu.dot_dimension_numbers<[1], [0], [0], [1], [0, 0, 1, 1], [], []>} : vector<28x32xf32>, vector<32x168xf32>, vector<28x168xf32> -> vector<28x168xf32>
    %16 = arith.addf %10, %15 : vector<28x168xf32>
    %c0_20 = arith.constant 0 : index
    %c0_21 = arith.constant 0 : index
    %c3 = arith.constant 3 : index
    %c0_22 = arith.constant 0 : index
    %17 = vector.load %arg1[%c0_20, %c0_21, %c3, %c0_22] : memref<1x1x32x32xf32, #tpu.memory_space<vmem>>, vector<1x1x28x32xf32>
    %18 = vector.shape_cast %17 : vector<1x1x28x32xf32> to vector<28x32xf32>
    %c3_23 = arith.constant 3 : index
    %c0_24 = arith.constant 0 : index
    %c0_25 = arith.constant 0 : index
    %19 = vector.load %arg2[%c3_23, %c0_24, %c0_25] : memref<5x32x168xf32, #tpu.memory_space<vmem>>, vector<1x32x168xf32>
    %20 = vector.shape_cast %19 : vector<1x32x168xf32> to vector<32x168xf32>
    %cst_26 = arith.constant dense<0.000000e+00> : vector<28x168xf32>
    %21 = tpu.matmul %18, %20, %cst_26 {dimension_numbers = #tpu.dot_dimension_numbers<[1], [0], [0], [1], [0, 0, 1, 1], [], []>} : vector<28x32xf32>, vector<32x168xf32>, vector<28x168xf32> -> vector<28x168xf32>
    %22 = arith.addf %16, %21 : vector<28x168xf32>
    %c0_27 = arith.constant 0 : index
    %c0_28 = arith.constant 0 : index
    %c4 = arith.constant 4 : index
    %c0_29 = arith.constant 0 : index
    %23 = vector.load %arg1[%c0_27, %c0_28, %c4, %c0_29] : memref<1x1x32x32xf32, #tpu.memory_space<vmem>>, vector<1x1x28x32xf32>
    %24 = vector.shape_cast %23 : vector<1x1x28x32xf32> to vector<28x32xf32>
    %c4_30 = arith.constant 4 : index
    %c0_31 = arith.constant 0 : index
    %c0_32 = arith.constant 0 : index
    %25 = vector.load %arg2[%c4_30, %c0_31, %c0_32] : memref<5x32x168xf32, #tpu.memory_space<vmem>>, vector<1x32x168xf32>
    %26 = vector.shape_cast %25 : vector<1x32x168xf32> to vector<32x168xf32>
    %cst_33 = arith.constant dense<0.000000e+00> : vector<28x168xf32>
    %27 = tpu.matmul %24, %26, %cst_33 {dimension_numbers = #tpu.dot_dimension_numbers<[1], [0], [0], [1], [0, 0, 1, 1], [], []>} : vector<28x32xf32>, vector<32x168xf32>, vector<28x168xf32> -> vector<28x168xf32>
    %28 = arith.addf %22, %27 : vector<28x168xf32>
    %c0_34 = arith.constant 0 : index
    %c0_35 = arith.constant 0 : index
    %29 = vector.load %arg3[%c0_34, %c0_35] : memref<1x168xf32, #tpu.memory_space<vmem>>, vector<1x168xf32>
    %30 = vector.broadcast %29 : vector<1x168xf32> to vector<28x168xf32>
    %31 = arith.addf %28, %30 : vector<28x168xf32>
    %cst_36 = arith.constant 0.000000e+00 : f32
    %32 = vector.broadcast %cst_36 : f32 to vector<28x168xf32>
    %33 = arith.maximumf %31, %32 : vector<28x168xf32>
    %c0_37 = arith.constant 0 : index
    %c0_38 = arith.constant 0 : index
    %34 = vector.load %arg4[%c0_37, %c0_38] : memref<14x28xf32, #tpu.memory_space<vmem>>, vector<14x28xf32>
    %cst_39 = arith.constant dense<0.000000e+00> : vector<14x168xf32>
    %35 = tpu.matmul %34, %33, %cst_39 {dimension_numbers = #tpu.dot_dimension_numbers<[1], [0], [0], [1], [0, 0, 1, 1], [], []>} : vector<14x28xf32>, vector<28x168xf32>, vector<14x168xf32> -> vector<14x168xf32>
    %c0_40 = arith.constant 0 : index
    %c0_41 = arith.constant 0 : index
    %36 = vector.load %arg5[%c0_40, %c0_41] : memref<168x84xf32, #tpu.memory_space<vmem>>, vector<168x84xf32>
    %cst_42 = arith.constant dense<0.000000e+00> : vector<14x84xf32>
    %37 = tpu.matmul %35, %36, %cst_42 {dimension_numbers = #tpu.dot_dimension_numbers<[1], [0], [0], [1], [0, 0, 1, 1], [], []>} : vector<14x168xf32>, vector<168x84xf32>, vector<14x84xf32> -> vector<14x84xf32>
    %c0_43 = arith.constant 0 : index
    %c0_44 = arith.constant 0 : index
    %38 = vector.load %arg17[%c0_43, %c0_44] : memref<14x84xf32, #tpu.memory_space<vmem>>, vector<14x84xf32>
    tpu.vector_store %arg17[%c0_43, %c0_44], %37 {strides = array<i32>} : memref<14x84xf32, #tpu.memory_space<vmem>>, vector<14x84xf32>,
    %c0_45 = arith.constant 0 : index
    %c0_46 = arith.constant 0 : index
    %39 = vector.load %arg17[%c0_45, %c0_46] : memref<14x84xf32, #tpu.memory_space<vmem>>, vector<10x84xf32>
    %c0_47 = arith.constant 0 : index
    %c0_48 = arith.constant 0 : index
    %c0_49 = arith.constant 0 : index
    %40 = vector.load %arg6[%c0_47, %c0_48, %c0_49] : memref<5x84x160xf32, #tpu.memory_space<vmem>>, vector<1x84x160xf32>
    %41 = vector.shape_cast %40 : vector<1x84x160xf32> to vector<84x160xf32>
    %cst_50 = arith.constant dense<0.000000e+00> : vector<10x160xf32>
    %42 = tpu.matmul %39, %41, %cst_50 {dimension_numbers = #tpu.dot_dimension_numbers<[1], [0], [0], [1], [0, 0, 1, 1], [], []>} : vector<10x84xf32>, vector<84x160xf32>, vector<10x160xf32> -> vector<10x160xf32>
    %c1_51 = arith.constant 1 : index
    %c0_52 = arith.constant 0 : index
    %43 = vector.load %arg17[%c1_51, %c0_52] : memref<14x84xf32, #tpu.memory_space<vmem>>, vector<10x84xf32>
    %c1_53 = arith.constant 1 : index
    %c0_54 = arith.constant 0 : index
    %c0_55 = arith.constant 0 : index
    %44 = vector.load %arg6[%c1_53, %c0_54, %c0_55] : memref<5x84x160xf32, #tpu.memory_space<vmem>>, vector<1x84x160xf32>
    %45 = vector.shape_cast %44 : vector<1x84x160xf32> to vector<84x160xf32>
    %cst_56 = arith.constant dense<0.000000e+00> : vector<10x160xf32>
    %46 = tpu.matmul %43, %45, %cst_56 {dimension_numbers = #tpu.dot_dimension_numbers<[1], [0], [0], [1], [0, 0, 1, 1], [], []>} : vector<10x84xf32>, vector<84x160xf32>, vector<10x160xf32> -> vector<10x160xf32>
    %47 = arith.addf %42, %46 : vector<10x160xf32>
    %c2_57 = arith.constant 2 : index
    %c0_58 = arith.constant 0 : index
    %48 = vector.load %arg17[%c2_57, %c0_58] : memref<14x84xf32, #tpu.memory_space<vmem>>, vector<10x84xf32>
    %c2_59 = arith.constant 2 : index
    %c0_60 = arith.constant 0 : index
    %c0_61 = arith.constant 0 : index
    %49 = vector.load %arg6[%c2_59, %c0_60, %c0_61] : memref<5x84x160xf32, #tpu.memory_space<vmem>>, vector<1x84x160xf32>
    %50 = vector.shape_cast %49 : vector<1x84x160xf32> to vector<84x160xf32>
    %cst_62 = arith.constant dense<0.000000e+00> : vector<10x160xf32>
    %51 = tpu.matmul %48, %50, %cst_62 {dimension_numbers = #tpu.dot_dimension_numbers<[1], [0], [0], [1], [0, 0, 1, 1], [], []>} : vector<10x84xf32>, vector<84x160xf32>, vector<10x160xf32> -> vector<10x160xf32>
    %52 = arith.addf %47, %51 : vector<10x160xf32>
    %c3_63 = arith.constant 3 : index
    %c0_64 = arith.constant 0 : index
    %53 = vector.load %arg17[%c3_63, %c0_64] : memref<14x84xf32, #tpu.memory_space<vmem>>, vector<10x84xf32>
    %c3_65 = arith.constant 3 : index
    %c0_66 = arith.constant 0 : index
    %c0_67 = arith.constant 0 : index
    %54 = vector.load %arg6[%c3_65, %c0_66, %c0_67] : memref<5x84x160xf32, #tpu.memory_space<vmem>>, vector<1x84x160xf32>
    %55 = vector.shape_cast %54 : vector<1x84x160xf32> to vector<84x160xf32>
    %cst_68 = arith.constant dense<0.000000e+00> : vector<10x160xf32>
    %56 = tpu.matmul %53, %55, %cst_68 {dimension_numbers = #tpu.dot_dimension_numbers<[1], [0], [0], [1], [0, 0, 1, 1], [], []>} : vector<10x84xf32>, vector<84x160xf32>, vector<10x160xf32> -> vector<10x160xf32>
    %57 = arith.addf %52, %56 : vector<10x160xf32>
    %c4_69 = arith.constant 4 : index
    %c0_70 = arith.constant 0 : index
    %58 = vector.load %arg17[%c4_69, %c0_70] : memref<14x84xf32, #tpu.memory_space<vmem>>, vector<10x84xf32>
    %c4_71 = arith.constant 4 : index
    %c0_72 = arith.constant 0 : index
    %c0_73 = arith.constant 0 : index
    %59 = vector.load %arg6[%c4_71, %c0_72, %c0_73] : memref<5x84x160xf32, #tpu.memory_space<vmem>>, vector<1x84x160xf32>
    %60 = vector.shape_cast %59 : vector<1x84x160xf32> to vector<84x160xf32>
    %cst_74 = arith.constant dense<0.000000e+00> : vector<10x160xf32>
    %61 = tpu.matmul %58, %60, %cst_74 {dimension_numbers = #tpu.dot_dimension_numbers<[1], [0], [0], [1], [0, 0, 1, 1], [], []>} : vector<10x84xf32>, vector<84x160xf32>, vector<10x160xf32> -> vector<10x160xf32>
    %62 = arith.addf %57, %61 : vector<10x160xf32>
    %c0_75 = arith.constant 0 : index
    %c0_76 = arith.constant 0 : index
    %63 = vector.load %arg7[%c0_75, %c0_76] : memref<1x160xf32, #tpu.memory_space<vmem>>, vector<1x160xf32>
    %64 = vector.broadcast %63 : vector<1x160xf32> to vector<10x160xf32>
    %65 = arith.addf %62, %64 : vector<10x160xf32>
    %cst_77 = arith.constant 0.000000e+00 : f32
    %66 = vector.broadcast %cst_77 : f32 to vector<10x160xf32>
    %67 = arith.maximumf %65, %66 : vector<10x160xf32>
    %c0_78 = arith.constant 0 : index
    %c0_79 = arith.constant 0 : index
    %68 = vector.load %arg8[%c0_78, %c0_79] : memref<5x10xf32, #tpu.memory_space<vmem>>, vector<5x10xf32>
    %cst_80 = arith.constant dense<0.000000e+00> : vector<5x160xf32>
    %69 = tpu.matmul %68, %67, %cst_80 {dimension_numbers = #tpu.dot_dimension_numbers<[1], [0], [0], [1], [0, 0, 1, 1], [], []>} : vector<5x10xf32>, vector<10x160xf32>, vector<5x160xf32> -> vector<5x160xf32>
    %c0_81 = arith.constant 0 : index
    %c0_82 = arith.constant 0 : index
    %70 = vector.load %arg9[%c0_81, %c0_82] : memref<160x80xf32, #tpu.memory_space<vmem>>, vector<160x80xf32>
    %cst_83 = arith.constant dense<0.000000e+00> : vector<5x80xf32>
    %71 = tpu.matmul %69, %70, %cst_83 {dimension_numbers = #tpu.dot_dimension_numbers<[1], [0], [0], [1], [0, 0, 1, 1], [], []>} : vector<5x160xf32>, vector<160x80xf32>, vector<5x80xf32> -> vector<5x80xf32>
    %c0_84 = arith.constant 0 : index
    %c0_85 = arith.constant 0 : index
    %72 = vector.load %arg18[%c0_84, %c0_85] : memref<5x80xf32, #tpu.memory_space<vmem>>, vector<5x80xf32>
    tpu.vector_store %arg18[%c0_84, %c0_85], %71 {strides = array<i32>} : memref<5x80xf32, #tpu.memory_space<vmem>>, vector<5x80xf32>,
    %c0_86 = arith.constant 0 : index
    %c0_87 = arith.constant 0 : index
    %73 = vector.load %arg18[%c0_86, %c0_87] : memref<5x80xf32, #tpu.memory_space<vmem>>, vector<1x80xf32>
    %c0_88 = arith.constant 0 : index
    %c0_89 = arith.constant 0 : index
    %c0_90 = arith.constant 0 : index
    %74 = vector.load %arg10[%c0_88, %c0_89, %c0_90] : memref<5x80x120xf32, #tpu.memory_space<vmem>>, vector<1x80x120xf32>
    %75 = vector.shape_cast %74 : vector<1x80x120xf32> to vector<80x120xf32>
    %cst_91 = arith.constant dense<0.000000e+00> : vector<1x120xf32>
    %76 = tpu.matmul %73, %75, %cst_91 {dimension_numbers = #tpu.dot_dimension_numbers<[1], [0], [0], [1], [0, 0, 1, 1], [], []>} : vector<1x80xf32>, vector<80x120xf32>, vector<1x120xf32> -> vector<1x120xf32>
    %c1_92 = arith.constant 1 : index
    %c0_93 = arith.constant 0 : index
    %77 = vector.load %arg18[%c1_92, %c0_93] : memref<5x80xf32, #tpu.memory_space<vmem>>, vector<1x80xf32>
    %c1_94 = arith.constant 1 : index
    %c0_95 = arith.constant 0 : index
    %c0_96 = arith.constant 0 : index
    %78 = vector.load %arg10[%c1_94, %c0_95, %c0_96] : memref<5x80x120xf32, #tpu.memory_space<vmem>>, vector<1x80x120xf32>
    %79 = vector.shape_cast %78 : vector<1x80x120xf32> to vector<80x120xf32>
    %cst_97 = arith.constant dense<0.000000e+00> : vector<1x120xf32>
    %80 = tpu.matmul %77, %79, %cst_97 {dimension_numbers = #tpu.dot_dimension_numbers<[1], [0], [0], [1], [0, 0, 1, 1], [], []>} : vector<1x80xf32>, vector<80x120xf32>, vector<1x120xf32> -> vector<1x120xf32>
    %81 = arith.addf %76, %80 : vector<1x120xf32>
    %c2_98 = arith.constant 2 : index
    %c0_99 = arith.constant 0 : index
    %82 = vector.load %arg18[%c2_98, %c0_99] : memref<5x80xf32, #tpu.memory_space<vmem>>, vector<1x80xf32>
    %c2_100 = arith.constant 2 : index
    %c0_101 = arith.constant 0 : index
    %c0_102 = arith.constant 0 : index
    %83 = vector.load %arg10[%c2_100, %c0_101, %c0_102] : memref<5x80x120xf32, #tpu.memory_space<vmem>>, vector<1x80x120xf32>
    %84 = vector.shape_cast %83 : vector<1x80x120xf32> to vector<80x120xf32>
    %cst_103 = arith.constant dense<0.000000e+00> : vector<1x120xf32>
    %85 = tpu.matmul %82, %84, %cst_103 {dimension_numbers = #tpu.dot_dimension_numbers<[1], [0], [0], [1], [0, 0, 1, 1], [], []>} : vector<1x80xf32>, vector<80x120xf32>, vector<1x120xf32> -> vector<1x120xf32>
    %86 = arith.addf %81, %85 : vector<1x120xf32>
    %c3_104 = arith.constant 3 : index
    %c0_105 = arith.constant 0 : index
    %87 = vector.load %arg18[%c3_104, %c0_105] : memref<5x80xf32, #tpu.memory_space<vmem>>, vector<1x80xf32>
    %c3_106 = arith.constant 3 : index
    %c0_107 = arith.constant 0 : index
    %c0_108 = arith.constant 0 : index
    %88 = vector.load %arg10[%c3_106, %c0_107, %c0_108] : memref<5x80x120xf32, #tpu.memory_space<vmem>>, vector<1x80x120xf32>
    %89 = vector.shape_cast %88 : vector<1x80x120xf32> to vector<80x120xf32>
    %cst_109 = arith.constant dense<0.000000e+00> : vector<1x120xf32>
    %90 = tpu.matmul %87, %89, %cst_109 {dimension_numbers = #tpu.dot_dimension_numbers<[1], [0], [0], [1], [0, 0, 1, 1], [], []>} : vector<1x80xf32>, vector<80x120xf32>, vector<1x120xf32> -> vector<1x120xf32>
    %91 = arith.addf %86, %90 : vector<1x120xf32>
    %c4_110 = arith.constant 4 : index
    %c0_111 = arith.constant 0 : index
    %92 = vector.load %arg18[%c4_110, %c0_111] : memref<5x80xf32, #tpu.memory_space<vmem>>, vector<1x80xf32>
    %c4_112 = arith.constant 4 : index
    %c0_113 = arith.constant 0 : index
    %c0_114 = arith.constant 0 : index
    %93 = vector.load %arg10[%c4_112, %c0_113, %c0_114] : memref<5x80x120xf32, #tpu.memory_space<vmem>>, vector<1x80x120xf32>
    %94 = vector.shape_cast %93 : vector<1x80x120xf32> to vector<80x120xf32>
    %cst_115 = arith.constant dense<0.000000e+00> : vector<1x120xf32>
    %95 = tpu.matmul %92, %94, %cst_115 {dimension_numbers = #tpu.dot_dimension_numbers<[1], [0], [0], [1], [0, 0, 1, 1], [], []>} : vector<1x80xf32>, vector<80x120xf32>, vector<1x120xf32> -> vector<1x120xf32>
    %96 = arith.addf %91, %95 : vector<1x120xf32>
    %c0_116 = arith.constant 0 : index
    %c0_117 = arith.constant 0 : index
    %97 = vector.load %arg11[%c0_116, %c0_117] : memref<1x120xf32, #tpu.memory_space<vmem>>, vector<1x120xf32>
    %98 = arith.addf %96, %97 : vector<1x120xf32>
    %cst_118 = arith.constant 0.000000e+00 : f32
    %99 = vector.broadcast %cst_118 : f32 to vector<1x120xf32>
    %100 = arith.maximumf %98, %99 : vector<1x120xf32>
    %c0_119 = arith.constant 0 : index
    %c0_120 = arith.constant 0 : index
    %101 = vector.load %arg12[%c0_119, %c0_120] : memref<120x84xf32, #tpu.memory_space<vmem>>, vector<120x84xf32>
    %cst_121 = arith.constant dense<0.000000e+00> : vector<1x84xf32>
    %102 = tpu.matmul %100, %101, %cst_121 {dimension_numbers = #tpu.dot_dimension_numbers<[1], [0], [0], [1], [0, 0, 1, 1], [], []>} : vector<1x120xf32>, vector<120x84xf32>, vector<1x84xf32> -> vector<1x84xf32>
    %c0_122 = arith.constant 0 : index
    %c0_123 = arith.constant 0 : index
    %103 = vector.load %arg13[%c0_122, %c0_123] : memref<1x84xf32, #tpu.memory_space<vmem>>, vector<1x84xf32>
    %104 = arith.addf %102, %103 : vector<1x84xf32>
    %cst_124 = arith.constant 0.000000e+00 : f32
    %105 = vector.broadcast %cst_124 : f32 to vector<1x84xf32>
    %106 = arith.maximumf %104, %105 : vector<1x84xf32>
    %c0_125 = arith.constant 0 : index
    %c0_126 = arith.constant 0 : index
    %107 = vector.load %arg14[%c0_125, %c0_126] : memref<84x10xf32, #tpu.memory_space<vmem>>, vector<84x10xf32>
    %cst_127 = arith.constant dense<0.000000e+00> : vector<1x10xf32>
    %108 = tpu.matmul %106, %107, %cst_127 {dimension_numbers = #tpu.dot_dimension_numbers<[1], [0], [0], [1], [0, 0, 1, 1], [], []>} : vector<1x84xf32>, vector<84x10xf32>, vector<1x10xf32> -> vector<1x10xf32>
    %c0_128 = arith.constant 0 : index
    %c0_129 = arith.constant 0 : index
    %109 = vector.load %arg15[%c0_128, %c0_129] : memref<1x10xf32, #tpu.memory_space<vmem>>, vector<1x10xf32>
    %110 = arith.addf %108, %109 : vector<1x10xf32>
    %c0_130 = arith.constant 0 : index
    %c0_131 = arith.constant 0 : index
    %c0_132 = arith.constant 0 : index
    %111 = vector.load %arg16[%c0_130, %c0_131, %c0_132] : memref<1x1x10xf32, #tpu.memory_space<vmem>>, vector<1x1x10xf32>
    %112 = vector.shape_cast %111 : vector<1x1x10xf32> to vector<1x10xf32>
    %113 = vector.shape_cast %110 : vector<1x10xf32> to vector<1x1x10xf32>
    tpu.vector_store %arg16[%c0_130, %c0_131, %c0_132], %113 {strides = array<i32>} : memref<1x1x10xf32, #tpu.memory_space<vmem>>, vector<1x1x10xf32>,
    return
  }
  func.func @transform_0(%arg0: i32) -> (i32, i32, i32, i32) {
    %c0_i32 = arith.constant 0 : i32
    %c0_i32_0 = arith.constant 0 : i32
    %c0_i32_1 = arith.constant 0 : i32
    %c0_i32_2 = arith.constant 0 : i32
    return %arg0, %c0_i32, %c0_i32_0, %c0_i32_1 : i32, i32, i32, i32
  }
  func.func @transform_1(%arg0: i32) -> (i32, i32, i32) {
    %c0_i32 = arith.constant 0 : i32
    %c0_i32_0 = arith.constant 0 : i32
    %c0_i32_1 = arith.constant 0 : i32
    %c0_i32_2 = arith.constant 0 : i32
    return %c0_i32, %c0_i32_0, %c0_i32_1 : i32, i32, i32
  }
  func.func @transform_2(%arg0: i32) -> (i32, i32) {
    %c0_i32 = arith.constant 0 : i32
    %c0_i32_0 = arith.constant 0 : i32
    %c0_i32_1 = arith.constant 0 : i32
    return %c0_i32, %c0_i32_0 : i32, i32
  }
  func.func @transform_3(%arg0: i32) -> (i32, i32) {
    %c0_i32 = arith.constant 0 : i32
    %c0_i32_0 = arith.constant 0 : i32
    %c0_i32_1 = arith.constant 0 : i32
    return %c0_i32, %c0_i32_0 : i32, i32
  }
  func.func @transform_4(%arg0: i32) -> (i32, i32) {
    %c0_i32 = arith.constant 0 : i32
    %c0_i32_0 = arith.constant 0 : i32
    %c0_i32_1 = arith.constant 0 : i32
    return %c0_i32, %c0_i32_0 : i32, i32
  }
  func.func @transform_5(%arg0: i32) -> (i32, i32, i32) {
    %c0_i32 = arith.constant 0 : i32
    %c0_i32_0 = arith.constant 0 : i32
    %c0_i32_1 = arith.constant 0 : i32
    %c0_i32_2 = arith.constant 0 : i32
    return %c0_i32, %c0_i32_0, %c0_i32_1 : i32, i32, i32
  }
  func.func @transform_6(%arg0: i32) -> (i32, i32) {
    %c0_i32 = arith.constant 0 : i32
    %c0_i32_0 = arith.constant 0 : i32
    %c0_i32_1 = arith.constant 0 : i32
    return %c0_i32, %c0_i32_0 : i32, i32
  }
  func.func @transform_7(%arg0: i32) -> (i32, i32) {
    %c0_i32 = arith.constant 0 : i32
    %c0_i32_0 = arith.constant 0 : i32
    %c0_i32_1 = arith.constant 0 : i32
    return %c0_i32, %c0_i32_0 : i32, i32
  }
  func.func @transform_8(%arg0: i32) -> (i32, i32) {
    %c0_i32 = arith.constant 0 : i32
    %c0_i32_0 = arith.constant 0 : i32
    %c0_i32_1 = arith.constant 0 : i32
    return %c0_i32, %c0_i32_0 : i32, i32
  }
  func.func @transform_9(%arg0: i32) -> (i32, i32, i32) {
    %c0_i32 = arith.constant 0 : i32
    %c0_i32_0 = arith.constant 0 : i32
    %c0_i32_1 = arith.constant 0 : i32
    %c0_i32_2 = arith.constant 0 : i32
    return %c0_i32, %c0_i32_0, %c0_i32_1 : i32, i32, i32
  }
  func.func @transform_10(%arg0: i32) -> (i32, i32) {
    %c0_i32 = arith.constant 0 : i32
    %c0_i32_0 = arith.constant 0 : i32
    %c0_i32_1 = arith.constant 0 : i32
    return %c0_i32, %c0_i32_0 : i32, i32
  }
  func.func @transform_11(%arg0: i32) -> (i32, i32) {
    %c0_i32 = arith.constant 0 : i32
    %c0_i32_0 = arith.constant 0 : i32
    %c0_i32_1 = arith.constant 0 : i32
    return %c0_i32, %c0_i32_0 : i32, i32
  }
  func.func @transform_12(%arg0: i32) -> (i32, i32) {
    %c0_i32 = arith.constant 0 : i32
    %c0_i32_0 = arith.constant 0 : i32
    %c0_i32_1 = arith.constant 0 : i32
    return %c0_i32, %c0_i32_0 : i32, i32
  }
  func.func @transform_13(%arg0: i32) -> (i32, i32) {
    %c0_i32 = arith.constant 0 : i32
    %c0_i32_0 = arith.constant 0 : i32
    %c0_i32_1 = arith.constant 0 : i32
    return %c0_i32, %c0_i32_0 : i32, i32
  }
  func.func @transform_14(%arg0: i32) -> (i32, i32) {
    %c0_i32 = arith.constant 0 : i32
    %c0_i32_0 = arith.constant 0 : i32
    %c0_i32_1 = arith.constant 0 : i32
    return %c0_i32, %c0_i32_0 : i32, i32
  }
  func.func @transform_15(%arg0: i32) -> (i32, i32, i32) {
    %c0_i32 = arith.constant 0 : i32
    %c0_i32_0 = arith.constant 0 : i32
    %c0_i32_1 = arith.constant 0 : i32
    return %arg0, %c0_i32, %c0_i32_0 : i32, i32, i32
  }
}

</mosaic_0001>

<bundles_post_ra>
// kernel: lenet5_forward.1
= control target key start
LH: loop header
LB: loop body
LE: loop exit
PB: predicated region body
PF: predicated region fallthrough
CT: control target
= control target key end

     0   :  { %20 = vsyncpa [#allocation5], 0  ;;  %s4944_s0 = inlined_call_operand.vmem [shape: f32[2,1,32,32], index: 0, kind: input, shape index: {}]   ;;  %s4945_s1 = inlined_call_operand.vmem [shape: f32[5,32,168], index: 1, kind: input, shape index: {}]   ;;  %s4946_s2 = inlined_call_operand.vmem [shape: f32[1,168], index: 2, kind: input, shape index: {}]   ;;  %s4947_s3 = inlined_call_operand.vmem [shape: f32[14,28], index: 3, kind: input, shape index: {}]   ;;  %s4948_s4 = inlined_call_operand.vmem [shape: f32[168,84], index: 4, kind: input, shape index: {}]   ;;  %s4949_s5 = inlined_call_operand.vmem [shape: f32[5,84,160], index: 5, kind: input, shape index: {}]   ;;  %s4950_s6 = inlined_call_operand.vmem [shape: f32[1,160], index: 6, kind: input, shape index: {}]   ;;  %s4951_s7 = inlined_call_operand.vmem [shape: f32[5,10], index: 7, kind: input, shape index: {}]   ;;  %s4952_s8 = inlined_call_operand.vmem [shape: f32[160,80], index: 8, kind: input, shape index: {}]   ;;  %s4953_s9 = inlined_call_operand.vmem [shape: f32[5,80,120], index: 9, kind: input, shape index: {}]   ;;  %s4954_s10 = inlined_call_operand.vmem [shape: f32[1,120], index: 10, kind: input, shape index: {}]   ;;  %s4955_s11 = inlined_call_operand.vmem [shape: f32[120,84], index: 11, kind: input, shape index: {}]   ;;  %s4956_s12 = inlined_call_operand.vmem [shape: f32[1,84], index: 12, kind: input, shape index: {}]   ;;  %s4957_s13 = inlined_call_operand.vmem [shape: f32[84,10], index: 13, kind: input, shape index: {}]   ;;  %s4958_s14 = inlined_call_operand.vmem [shape: f32[1,10], index: 14, kind: input, shape index: {}]   ;;  %s4959_s15 = inlined_call_operand.hbm [shape: f32[2,1,10], index: 15, kind: output, shape index: {}]  }
   0x1   :  { %22 = vsyncpa [#allocation5 + $0x1], 0  ;;  %s3824_s18 = smov 0   ;;  %s3826_s19 = smov 0  }
   0x2   :  { %s3828_s20 = smov 0   ;;  %s3830_s21 = smov 0  }
   0x3 LB: > { %4966 = sst [smem:[#allocation7_spill]] %s3725_s18  ;;  %s3845_s22 = sadd.s32 4294967295, %s3737_s21   ;;  %s3737_s21 = sphi %s3830_s21, %s4977_s21   ;;  %s3733_s20 = sphi %s3828_s20, %s4979_s20   ;;  %s3729_s19 = sphi %s3826_s19, %s4981_s19   ;;  %s3725_s18 = sphi %s3824_s18, %s4980_s18  }
   0x4   : > { %4967 = sst [smem:[#allocation8_spill]] %s3733_s20  ;;  %s2773_s23 = sadd.s32 4294967294, %s3737_s21  }
   0x5   : > { %4968 = sst [smem:[#allocation9_spill]] %s3737_s21  ;;  %s3849_s24 = sadd.s32 1, %s3737_s21  }
   0x6   : > { %4969 = sst [smem:[#allocation10_spill]] %s3849_s24  ;;  %s355_s25 = sadd.s32 1, %s3733_s20 }
   0x7   : > { %s352_s26 = ssub.s32 %s3737_s21, %s3849_s24  ;;  %p365_p0 = scmp.ne.s32.totalorder %s3733_s20, %s3729_s19 }
   0x8   : > { %p353_p1 = scmp.eq.s32.totalorder %s352_s26, 0  ;;  %p366_p2 = scmp.eq.s32.totalorder %s3845_s22, 1 }
   0x9   : > { %p371_p3 = scmp.ne.s32.totalorder %s3729_s19, %s3725_s18  ;;  %p372_p4 = scmp.eq.s32.totalorder %s2773_s23, 1 }
   0xa   : > { %s3860_s27 = scalar_select %p353_p1, %s3733_s20, %s355_s25  }
   0xb   : > { %p3862_p5 = por %p366_p2, %p365_p0  ;;  %p3866_p6 = por %p372_p4, %p371_p3 }
   0xc   : > { %4970 = sst [smem:[#allocation11_spill]] %s3860_s27  ;;  %p2776_p7 = scmp.ge.s32.totalorder %s3737_s21, 1 }
   0xd   : > { %s4972_s29 = scalar_select %p3866_p6, 1, 0 }
   0xe   : > { %p440_p8 = scmp.lt.s32.totalorder %s3737_s21, 3 }
   0xf   : > { %4973 = sst [smem:[#allocation12_spill]] %s4972_s29 }
  0x10   : > { %p441_p9 = pnand %p2776_p7, %p440_p8 }
  0x11   : > { %v2780_v0 = vld [vmem:[%s4945_s1 + $0x48] sm:$0xff] (!%p441_p9)  ;;  %v2782_v1 = vld [vmem:[%s4945_s1 + $0x58] sm:$0xff] (!%p441_p9)  ;;  %v2779_v2 = vld [vmem:[%s4945_s1 + $0x40] sm:$0xff] (!%p441_p9)  ;;  %p487_p10 = scmp.lt.s32.totalorder (!%p441_p9), %s3845_s22, 1  ;;  %v3739_v7 = vmov (!%p441_p9), 0.0   ;;  %vm517_vm0 = vcmask (!%p441_p9), 261120  }
  0x12   : > { %444 = sbr.rel (%p441_p9) target bundleno = 2220 (0x8ac), region = 80  ;;  %v3257_v3 = vpack.c.bf16 (!%p441_p9), %v2782_v1, %v2780_v0  ;;  %v2781_v4 = vld [vmem:[%s4945_s1 + $0x50] sm:$0xff] (!%p441_p9)  ;;  %v2784_v5 = vld [vmem:[%s4945_s1 + $0x68] sm:$0xff] (!%p441_p9)  ;;  %v2786_v6 = vld [vmem:[%s4945_s1 + $0x78] sm:$0xff] (!%p441_p9)  ;;  %594 = vmatprep.mubr.f32.mxu0 (!%p441_p9), %v3739_v7  ;;  %1194 = vmatprep.mubr.f32.mxu1 (!%p441_p9), %v3739_v7  ;;  %vm1123_vm1 = vcmask (!%p441_p9), 1043456   ;;  %vm3740_vm2 = vmmov (!%p441_p9), 1  }
  0x13   : > { %v3259_v8 = vpack.c.bf16 (!%p441_p9), %v2781_v4, %v2779_v2  ;;  %v3261_v9 = vpack.c.bf16 (!%p441_p9), %v2786_v6, %v2784_v5  ;;  %v2783_v10 = vld [vmem:[%s4945_s1 + $0x60] sm:$0xff] (!%p441_p9)  ;;  %v2785_v11 = vld [vmem:[%s4945_s1 + $0x70] sm:$0xff] (!%p441_p9)  ;;  %v497_v12 = vld [vmem:[%s4945_s1 + $0x8] sm:$0xff] (!%p441_p9)  ;;  %vm1116_vm4 = vcmask (!%p441_p9), 228352   ;;  %vm1228_vm5 = vcmask (!%p441_p9), 326656   ;;  %s485_s26 = sand.u32 (!%p441_p9), 1, %s3729_s19  }
  0x14   : > { %3258 = vmatprep.subr.bf16.mxu0 (!%p441_p9), %v3257_v3  ;;  %v499_v13 = vld [vmem:[%s4945_s1 + $0x18] sm:$0xff] (!%p441_p9)  ;;  %v3263_v14 = vpack.c.bf16 (!%p441_p9), %v2785_v11, %v2783_v10  ;;  %v496_v16 = vld [vmem:[%s4945_s1] sm:$0xff] (!%p441_p9)  ;;  %v498_v17 = vld [vmem:[%s4945_s1 + $0x10] sm:$0xff] (!%p441_p9)  ;;  %vm1310_vm6 = vcmask (!%p441_p9), 687104   ;;  %vm1312_vm7 = vcmask (!%p441_p9), 685056   ;;  %vm1920_vm8 = vcmask (!%p441_p9), 1041408  }
  0x15   : > { %3260 = vmatpush1.bf16.msra.mxu0 (!%p441_p9), %v3259_v8  ;;  %v3265_v15 = vpack.c.bf16 (!%p441_p9), %v499_v13, %v497_v12  ;;  %v501_v18 = vld [vmem:[%s4945_s1 + $0x28] sm:$0xff] (!%p441_p9)  ;;  %v503_v19 = vld [vmem:[%s4945_s1 + $0x38] sm:$0xff] (!%p441_p9)  ;;  %v3267_v21 = vpack.c.bf16 (!%p441_p9), %v498_v17, %v496_v16  ;;  %v500_v23 = vld [vmem:[%s4945_s1 + $0x20] sm:$0xff] (!%p441_p9)  ;;  %vm1916_vm10 = vcmask (!%p441_p9), 80896   ;;  %vm3742_vm11 = vmmov (!%p441_p9), 0   ;;  %s2706_s29 = scalar_lea.sflag (!%p441_p9), [#allocation5], %s485_s26 }
  0x16   : > { %3262 = vmatprep.subr.bf16.mxu0 (!%p441_p9), %v3261_v9  ;;  %v3269_v22 = vpack.c.bf16 (!%p441_p9), %v503_v19, %v501_v18  ;;  %v502_v24 = vld [vmem:[%s4945_s1 + $0x30] sm:$0xff] (!%p441_p9)  ;;  %v2796_v25 = vld [vmem:[%s4945_s1 + $0x88] sm:$0xff] (!%p441_p9)  ;;  %v2798_v26 = vld [vmem:[%s4945_s1 + $0x98] sm:$0xff] (!%p441_p9)  ;;  %v1088_v18 = vlaneseq (!%p441_p9)  ;;  %vm2091_vm12 = vcmask (!%p441_p9), 651264   ;;  %vm2116_vm13 = vcmask (!%p441_p9), 654336  }
  0x17   : > { %v3271_v28 = vpack.c.bf16 (!%p441_p9), %v502_v24, %v500_v23  ;;  %v3273_v29 = vpack.c.bf16 (!%p441_p9), %v2798_v26, %v2796_v25  ;;  %v2795_v32 = vld [vmem:[%s4945_s1 + $0x80] sm:$0xff] (!%p441_p9)  ;;  %v2797_v33 = vld [vmem:[%s4945_s1 + $0x90] sm:$0xff] (!%p441_p9)  ;;  %v2800_v34 = vld [vmem:[%s4945_s1 + $0xa8] sm:$0xff] (!%p441_p9)  ;;  %vm2540_vm14 = vcmask (!%p441_p9), 982016   ;;  %vm2703_vm15 = vcmask (!%p441_p9), 73728  }
  0x18   : > { %v2802_v35 = vld [vmem:[%s4945_s1 + $0xb8] sm:$0xff] (!%p441_p9)  ;;  %v3275_v37 = vpack.c.bf16 (!%p441_p9), %v2797_v33, %v2795_v32  ;;  %v2799_v39 = vld [vmem:[%s4945_s1 + $0xa0] sm:$0xff] (!%p441_p9)  ;;  %v2801_v40 = vld [vmem:[%s4945_s1 + $0xb0] sm:$0xff] (!%p441_p9)  ;;  %v4061_v19 = vshrl.u32 (!%p441_p9), %v1088_v18, 7 }
  0x19   : > { %s488_s24 = scalar_select %p487_p10, %s3845_s22, 1  ;;  %3264 = vmatpush1.bf16.msra.mxu0 %v3263_v14  ;;  %v3277_v38 = vpack.c.bf16 %v2802_v35, %v2800_v34  ;;  %v2808_v41 = vld [vmem:[%s4945_s1 + $0xc8] sm:$0xff]  ;;  %v2810_v42 = vld [vmem:[%s4945_s1 + $0xd8] sm:$0xff]  ;;  %v3279_v44 = vpack.c.bf16 %v2801_v40, %v2799_v39  ;;  %v2807_v48 = vld [vmem:[%s4945_s1 + $0xc0] sm:$0xff] }
  0x1a   : > { %3266 = vmatprep.subr.bf16.mxu0 %v3265_v15  ;;  %v3281_v45 = vpack.c.bf16 %v2810_v42, %v2808_v41  ;;  %v2809_v49 = vld [vmem:[%s4945_s1 + $0xd0] sm:$0xff]  ;;  %v2812_v50 = vld [vmem:[%s4945_s1 + $0xe8] sm:$0xff]  ;;  %v2814_v51 = vld [vmem:[%s4945_s1 + $0xf8] sm:$0xff] }
  0x1b   : > { %s3000_s16 = sshll.u32 %s488_s24, 5  ;;  %v3283_v53 = vpack.c.bf16 %v2809_v49, %v2807_v48  ;;  %v3285_v54 = vpack.c.bf16 %v2814_v51, %v2812_v50  ;;  %v2811_v55 = vld [vmem:[%s4945_s1 + $0xe0] sm:$0xff]  ;;  %v2813_v56 = vld [vmem:[%s4945_s1 + $0xf0] sm:$0xff]  ;;  %v2820_v57 = vld [vmem:[%s4945_s1 + $0x108] sm:$0xff]  ;;  %s2997_s24 = sshll.u32 %s3845_s22, 4 }
  0x1c   : > { %s3909_s18 = scalar_lea.vmem %s4944_s0, %s3000_s16  ;;  %v2822_v58 = vld [vmem:[%s4945_s1 + $0x118] sm:$0xff]  ;;  %v3287_v60 = vpack.c.bf16 %v2813_v56, %v2811_v55  ;;  %v2819_v0 = vld [vmem:[%s4945_s1 + $0x100] sm:$0xff]  ;;  %v2821_v1 = vld [vmem:[%s4945_s1 + $0x110] sm:$0xff]  ;;  %s486_s16 = scalar_lea.vmem [#allocation4], %s485_s26 }
  0x1d   : > { %v504_v20 = vld [vmem:[%s3909_s18 + $0x1] sm:$0xff]  ;;  %v505_v27 = vld [vmem:[%s3909_s18 + $0x9] sm:$0xff]  ;;  %v506_v30 = vld [vmem:[%s3909_s18 + $0x11] sm:$0xff]  ;;  %v3289_v61 = vpack.c.bf16 %v2822_v58, %v2820_v57  ;;  %v3291_v5 = vpack.c.bf16 %v2821_v1, %v2819_v0  ;;  %v3741_v57 = vmov 0.0|0.0   ;;  %s2718_s17 = sshll.u32 %s486_s16, 4  ;;  %s4902_s27 = scalar_lea.hbm %s4959_s15, %s2997_s24  ;;  %s4904_s17 = int_to_ptr.vmem [resolvable:$true] %s2718_s17 }
  0x1e   : > { %2787 = vmatmul.mubr.msk.f32.vlgmr.msra.gmra.mrb[0].mxu0 %vm517_vm0, %v504_v20  ;;  %v507_v31 = vld [vmem:[%s3909_s18 + $0x19] sm:$0xf]  ;;  %v492_v36 = vld [vmem:[%s3909_s18] sm:$0xff]  ;;  %v493_v43 = vld [vmem:[%s3909_s18 + $0x8] sm:$0xff]  ;;  %v1090_v20 = vsub.s32 0, %v4061_v19  ;;  %s3675_s21 = scalar_lea.vmem %s4904_s17, 16 }
  0x1f   : > { %600 = vmatprep.mubr.f32.mxu0 %v3739_v7  ;;  %3268 = vmatpush1.bf16.msra.mxu0 %v3267_v21  ;;  %v494_v46 = vld [vmem:[%s3909_s18 + $0x10] sm:$0xff]  ;;  %v495_v47 = vld [vmem:[%s3909_s18 + $0x18] sm:$0xf]  ;;  %v720_v52 = vld [vmem:[%s3909_s18 + $0x2] sm:$0xff]  ;;  %p3676_p11 = scmp.ne.s32.totalorder %s4904_s17, %s3675_s21  ;;  %s3743_s22 = smov [#allocation4]  }
  0x20   : > { %3270 = vmatprep.subr.bf16.mxu0 %v3269_v22  ;;  %v721_v59 = vld [vmem:[%s3909_s18 + $0xa] sm:$0xff]  ;;  %v722_v62 = vld [vmem:[%s3909_s18 + $0x12] sm:$0xff]  ;;  %v723_v63 = vld [vmem:[%s3909_s18 + $0x1a] sm:$0xf]  ;;  %v1094_v22 = vsub.s32 1, %v4061_v19  ;;  %s3679_s25 = sshll.u32 %s3743_s22, 4  ;;  %s3680_s25 = int_to_ptr.vmem [resolvable:$false] %s3679_s25 }
  0x21   : > { %v2824_v2 = vld [vmem:[%s4945_s1 + $0x128] sm:$0xff]  ;;  %v2826_v3 = vld [vmem:[%s4945_s1 + $0x138] sm:$0xff]  ;;  %v2823_v8 = vld [vmem:[%s4945_s1 + $0x120] sm:$0xff]  ;;  %p3677_p12 = pnand %p3676_p11, %p3862_p5  ;;  %s3681_s30 = scalar_lea.vmem %s3680_s25, 32 }
  0x22   : > { %2788 = vmatmul.mubr.msk.f32.gmra.mrb[2].mxu0 %vm517_vm0, %v505_v27  ;;  %v842_v4 = vld [vmem:[%s3909_s18 + $0x3] sm:$0xff]  ;;  %v3293_v6 = vpack.c.bf16 %v2826_v3, %v2824_v2  ;;  %v2825_v9 = vld [vmem:[%s4945_s1 + $0x130] sm:$0xff]  ;;  %v845_v13 = vld [vmem:[%s3909_s18 + $0x1b] sm:$0xf]  ;;  %p3682_p0 = scmp.lt.s32.totalorder %s4904_s17, %s3680_s25  ;;  %p3683_p1 = scmp.lt.s32.totalorder %s3681_s30, %s3675_s21 }
  0x23   : > { %606 = vmatprep.mubr.f32.mxu0 %v3739_v7  ;;  %3272 = vmatpush1.bf16.msra.mxu0 %v3271_v28  ;;  %v843_v10 = vld [vmem:[%s3909_s18 + $0xb] sm:$0xff]  ;;  %v3295_v11 = vpack.c.bf16 %v2825_v9, %v2823_v8  ;;  %v844_v12 = vld [vmem:[%s3909_s18 + $0x13] sm:$0xff]  ;;  %v967_v17 = vld [vmem:[%s3909_s18 + $0x1c] sm:$0xf]  ;;  %p3678_p13 = pneg %p3677_p12 }
  0x24   : > { %3274 = vmatprep.subr.bf16.mxu0 %v3273_v29  ;;  %v964_v14 = vld [vmem:[%s3909_s18 + $0x4] sm:$0xff]  ;;  %v965_v15 = vld [vmem:[%s3909_s18 + $0xc] sm:$0xff]  ;;  %v966_v16 = vld [vmem:[%s3909_s18 + $0x14] sm:$0xff]  ;;  %p3684_p2 = por %p3683_p1, %p3682_p0 }
  0x25   : > { %v1086_v21 = vld [vmem:[%s4946_s2] sm:$0x3]  ;;  %vm3302_vm3 = vmpackc.low %vm1123_vm1, %vm3740_vm2  ;;  %v1209_v58 = vld [vmem:[%s4948_s4 + $0x10] sm:$0xff] }
  0x26   : > { %2789 = vmatmul.mubr.msk.f32.gmra.mrb[4].mxu0 %vm517_vm0, %v506_v30  ;;  %v1091_v23 = vrot.slane %v1086_v21, %v1090_v20  ;;  %v1095_v25 = vrot.slane %v1086_v21, %v1094_v22  ;;  %v1114_v55 = vld [vmem:[%s4947_s3] sm:$0xff]  ;;  %v1213_v1 = vld [vmem:[%s4948_s4 + $0x30] sm:$0xff]  ;;  %v1214_v2 = vld [vmem:[%s4948_s4 + $0x38] sm:$0xff]  ;;  %p3685_p3 = pnand %p3684_p2, %p3678_p13 }
  0x27   : > { %612 = vmatprep.mubr.f32.mxu0 %v3739_v7  ;;  %v3317_v3 = vpack.c.bf16 %v1214_v2, %v1213_v1  ;;  %v1217_v8 = vld [vmem:[%s4948_s4 + $0x50] sm:$0xff]  ;;  %v1218_v9 = vld [vmem:[%s4948_s4 + $0x58] sm:$0xff]  ;;  %v1224_v18 = vld [vmem:[%s4948_s4 + $0x88] sm:$0xff] }
  0x28   : > { %v2857_v1 = vld [vmem:[%s4949_s5 + $0x150] sm:$0xf]  ;;  %vm3438_vm9 = vmpackc.low %vm1920_vm8, %vm3740_vm2  ;;  %v1998_v19 = vld [vmem:[%s4952_s8] sm:$0xff] }
  0x2a   : > { %2790 = vmatmul.mubr.msk.f32.gmra.mrb[6].mxu0 %vm517_vm0, %v507_v31 }
  0x2b   : > { %695 = vmatprep.mubr.f32.mxu0 %v3739_v7 }
  0x2e   : > { %2791 = vmatmul.mubr.msk.f32.vlgmr.msra.gmra.mrb[0].mxu0 %vm517_vm0, %v492_v36 }
  0x2f   : > { %701 = vmatprep.mubr.f32.mxu0 %v3739_v7  ;;  %3276 = vmatpush1.bf16.msra.mxu0 %v3275_v37 }
  0x30   : > { %3278 = vmatprep.subr.bf16.mxu0 %v3277_v38 }
  0x32   : > { %2792 = vmatmul.mubr.msk.f32.gmra.mrb[2].mxu0 %vm517_vm0, %v493_v43 }
  0x33   : > { %707 = vmatprep.mubr.f32.mxu0 %v3739_v7  ;;  %3280 = vmatpush1.bf16.msra.mxu0 %v3279_v44 }
  0x34   : > { %3282 = vmatprep.subr.bf16.mxu0 %v3281_v45 }
  0x36   : > { %2793 = vmatmul.mubr.msk.f32.gmra.mrb[4].mxu0 %vm517_vm0, %v494_v46 }
  0x37   : > { %713 = vmatprep.mubr.f32.mxu0 %v3739_v7 }
  0x3a   : > { %2794 = vmatmul.mubr.msk.f32.gmra.mrb[6].mxu0 %vm517_vm0, %v495_v47 }
  0x3b   : > { %809 = vmatprep.mubr.f32.mxu0 %v3739_v7 }
  0x3e   : > { %2803 = vmatmul.mubr.msk.f32.vlgmr.msra.gmra.mrb[0].mxu0 %vm517_vm0, %v720_v52 }
  0x3f   : > { %815 = vmatprep.mubr.f32.mxu0 %v3739_v7  ;;  %3284 = vmatpush1.bf16.msra.mxu0 %v3283_v53  ;;  %v1207_v53 = vld [vmem:[%s4948_s4] sm:$0xff] }
  0x40   : > { %3286 = vmatprep.subr.bf16.mxu0 %v3285_v54  ;;  %v1208_v54 = vld [vmem:[%s4948_s4 + $0x8] sm:$0xff] }
  0x41   : > { %v3308_v56 = vpack.c.bf16 %v1208_v54, %v1207_v53  ;;  %v2851_v53 = vld [vmem:[%s4949_s5 + $0x120] sm:$0xff] }
  0x42   : > { %2804 = vmatmul.mubr.msk.f32.gmra.mrb[2].mxu0 %vm517_vm0, %v721_v59  ;;  %v1210_v59 = vld [vmem:[%s4948_s4 + $0x18] sm:$0xff] }
  0x43   : > { %821 = vmatprep.mubr.f32.mxu0 %v3739_v7  ;;  %3288 = vmatpush1.bf16.msra.mxu0 %v3287_v60  ;;  %v1115_v60 = vld [vmem:[%s4947_s3 + $0x8] sm:$0x3f] }
  0x44   : > { %3290 = vmatprep.subr.bf16.mxu0 %v3289_v61  ;;  %v3311_v61 = vpack.c.bf16 %v1210_v59, %v1209_v58  ;;  %v2853_v59 = vld [vmem:[%s4949_s5 + $0x130] sm:$0xff] }
  0x46   : > { %2805 = vmatmul.mubr.msk.f32.gmra.mrb[4].mxu0 %vm517_vm0, %v722_v62  ;;  %v1211_v62 = vld [vmem:[%s4948_s4 + $0x20] sm:$0xff] }
  0x47   : > { %827 = vmatprep.mubr.f32.mxu0 %v3739_v7 }
  0x4a   : > { %2806 = vmatmul.mubr.msk.f32.gmra.mrb[6].mxu0 %vm517_vm0, %v723_v63  ;;  %v1212_v63 = vld [vmem:[%s4948_s4 + $0x28] sm:$0xff] }
  0x4b   : > { %931 = vmatprep.mubr.f32.mxu0 %v3739_v7  ;;  %v3314_v0 = vpack.c.bf16 %v1212_v63, %v1211_v62  ;;  %v2858_v62 = vld [vmem:[%s4949_s5 + $0x158] sm:$0xf]  ;;  %v1317_v63 = vld [vmem:[%s4949_s5 + $0x8] sm:$0xff] }
  0x4e   : > { %2815 = vmatmul.mubr.msk.f32.vlgmr.msra.gmra.mrb[0].mxu0 %vm517_vm0, %v842_v4  ;;  %v1215_v4 = vld [vmem:[%s4948_s4 + $0x40] sm:$0xff] }
  0x4f   : > { %937 = vmatprep.mubr.f32.mxu0 %v3739_v7  ;;  %3292 = vmatpush1.bf16.msra.mxu0 %v3291_v5  ;;  %v1216_v5 = vld [vmem:[%s4948_s4 + $0x48] sm:$0xff] }
  0x50   : > { %3294 = vmatprep.subr.bf16.mxu0 %v3293_v6  ;;  %v3320_v6 = vpack.c.bf16 %v1216_v5, %v1215_v4 }
  0x52   : > { %2816 = vmatmul.mubr.msk.f32.gmra.mrb[2].mxu0 %vm517_vm0, %v843_v10  ;;  %v3323_v10 = vpack.c.bf16 %v1218_v9, %v1217_v8  ;;  %v1316_v8 = vld [vmem:[%s4949_s5] sm:$0xff]  ;;  %v1318_v9 = vld [vmem:[%s4949_s5 + $0x10] sm:$0xff] }
  0x53   : > { %943 = vmatprep.mubr.f32.mxu0 %v3739_v7  ;;  %3296 = vmatpush1.bf16.msra.mxu0 %v3295_v11  ;;  %v1219_v11 = vld [vmem:[%s4948_s4 + $0x60] sm:$0xff] }
  0x56   : > { %2817 = vmatmul.mubr.msk.f32.gmra.mrb[4].mxu0 %vm517_vm0, %v844_v12  ;;  %v1220_v12 = vld [vmem:[%s4948_s4 + $0x68] sm:$0xff] }
  0x57   : > { %949 = vmatprep.mubr.f32.mxu0 %v3739_v7 }
  0x5a   : > { %2818 = vmatmul.mubr.msk.f32.gmra.mrb[6].mxu0 %vm517_vm0, %v845_v13  ;;  %v3326_v13 = vpack.c.bf16 %v1220_v12, %v1219_v11  ;;  %v1323_v11 = vld [vmem:[%s4949_s5 + $0x38] sm:$0xff]  ;;  %v3359_v12 = vpack.c.bf16 %v1318_v9, %v1316_v8  ;;  %v2883_v9 = vld [vmem:[%s4949_s5 + $0x1e0] sm:$0xff] }
  0x5b   : > { %1053 = vmatprep.mubr.f32.mxu0 %v3739_v7 }
  0x5e   : > { %2827 = vmatmul.mubr.msk.f32.vlgmr.msra.gmra.mrb[0].mxu0 %vm517_vm0, %v964_v14  ;;  %v1221_v14 = vld [vmem:[%s4948_s4 + $0x70] sm:$0xff] }
  0x5f   : > { %1059 = vmatprep.mubr.f32.mxu0 %v3739_v7 }
  0x62   : > { %2828 = vmatmul.mubr.msk.f32.gmra.mrb[2].mxu0 %vm517_vm0, %v965_v15  ;;  %v1222_v15 = vld [vmem:[%s4948_s4 + $0x78] sm:$0xff] }
  0x63   : > { %1065 = vmatprep.mubr.f32.mxu0 %v3739_v7 }
  0x66   : > { %2829 = vmatmul.mubr.msk.f32.gmra.mrb[4].mxu0 %vm517_vm0, %v966_v16  ;;  %v3329_v16 = vpack.c.bf16 %v1222_v15, %v1221_v14  ;;  %v1320_v14 = vld [vmem:[%s4949_s5 + $0x20] sm:$0xff]  ;;  %v1322_v15 = vld [vmem:[%s4949_s5 + $0x30] sm:$0xff] }
  0x67   : > { %1071 = vmatprep.mubr.f32.mxu0 %v3739_v7 }
  0x6a   : > { %2830 = vmatmul.mubr.msk.f32.gmra.mrb[6].mxu0 %vm517_vm0, %v967_v17  ;;  %v1223_v17 = vld [vmem:[%s4948_s4 + $0x80] sm:$0xff] }
  0x6b   : > { %1991 = vmatprep.mubr.f32.mxu0 %v3739_v7  ;;  %v3332_v21 = vpack.c.bf16 %v1224_v18, %v1223_v17  ;;  %v1325_v17 = vld [vmem:[%s4949_s5 + $0x48] sm:$0xff]  ;;  %v1327_v18 = vld [vmem:[%s4949_s5 + $0x58] sm:$0xff] }
 0x131   : > { %v1055_v24 = vpop.f32.mrb[0].mxu0 }
 0x132   : > { %v1057_v26 = vpop.f32.mrb[1].mxu0  ;;  %v1098_v27 = vadd.f32 %v1091_v23, %v1055_v24  ;;  %v1226_v24 = vld [vmem:[%s4948_s4 + $0x98] sm:$0xff] }
 0x133   : > { %v1099_v28 = vadd.f32 %v1095_v25, %v1057_v26  ;;  %v1227_v26 = vld [vmem:[%s4948_s4 + $0xa0] sm:$0xff] }
 0x134   : > { %v1106_v33 = vmax.f32 %v1098_v27, 0.0  ;;  %v2838_v27 = vld [vmem:[%s4949_s5 + $0xb8] sm:$0xff] }
 0x135   : > { %v1061_v29 = vpop.f32.mrb[2].mxu0  ;;  %v1107_v35 = vmax.f32 %v1099_v28, 0.0  ;;  %v2840_v28 = vld [vmem:[%s4949_s5 + $0xc8] sm:$0xff] }
 0x136   : > { %v1100_v30 = vadd.f32 %v1091_v23, %v1061_v29  ;;  %v1063_v31 = vpop.f32.mrb[3].mxu0  ;;  %v3337_v29 = vpack.c.bf16 %v2840_v28, %v2838_v27  ;;  %v1329_v27 = vld [vmem:[%s4949_s5 + $0x68] sm:$0xff]  ;;  %v1331_v28 = vld [vmem:[%s4949_s5 + $0x78] sm:$0xff] }
 0x137   : > { %v1101_v32 = vadd.f32 %v1095_v25, %v1063_v31  ;;  %v2839_v31 = vld [vmem:[%s4949_s5 + $0xc0] sm:$0xff] }
 0x138   : > { %v1108_v34 = vmax.f32 %v1100_v30, 0.0  ;;  %v2837_v30 = vld [vmem:[%s4949_s5 + $0xb0] sm:$0xff] }
 0x139   : > { %v1109_v36 = vmax.f32 %v1101_v32, 0.0  ;;  %v1067_v37 = vpop.f32.mrb[4].mxu0  ;;  %v2842_v32 = vld [vmem:[%s4949_s5 + $0xd8] sm:$0xff] }
 0x13a   : > { %v1069_v38 = vpop.f32.mrb[5].mxu0  ;;  %v3299_v39 = vpack.c.bf16 %v1108_v34, %v1106_v33  ;;  %v1102_v41 = vadd.f32 %v1091_v23, %v1067_v37  ;;  %v2844_v33 = vld [vmem:[%s4949_s5 + $0xe8] sm:$0xff] }
 0x13b   : > { %v3297_v40 = vpack.c.bf16 %v1109_v36, %v1107_v35  ;;  %v1103_v42 = vadd.f32 %v1095_v25, %v1069_v38  ;;  %v3339_v35 = vpack.c.bf16 %v2839_v31, %v2837_v30  ;;  %v3341_v37 = vpack.c.bf16 %v2844_v33, %v2842_v32  ;;  %v2841_v38 = vld [vmem:[%s4949_s5 + $0xd0] sm:$0xff]  ;;  %v1328_v31 = vld [vmem:[%s4949_s5 + $0x60] sm:$0xff]  ;;  %v1333_v33 = vld [vmem:[%s4949_s5 + $0x88] sm:$0xff] }
 0x13c   : > { %v1110_v47 = vmax.f32 %v1102_v41, 0.0  ;;  %v2848_v41 = vld [vmem:[%s4949_s5 + $0x108] sm:$0xff]  ;;  %v3369_v30 = vpack.c.bf16 %v1331_v28, %v1329_v27  ;;  %v1330_v32 = vld [vmem:[%s4949_s5 + $0x70] sm:$0xff]  ;;  %v2899_v27 = vld [vmem:[%s4949_s5 + $0x240] sm:$0xff] }
 0x13d   : > { %v1073_v43 = vpop.f32.mrb[6].mxu0  ;;  %3298 = vmatprep.subr.bf16.mxu1 %v3297_v40  ;;  %v1111_v49 = vmax.f32 %v1103_v42, 0.0  ;;  %v2846_v40 = vld [vmem:[%s4949_s5 + $0xf8] sm:$0xff] }
 0x13e   : > { %v1104_v44 = vadd.f32 %v1091_v23, %v1073_v43  ;;  %v1075_v45 = vpop.f32.mrb[7].mxu0  ;;  %3300 = vmatpush1.bf16.msra.mxu1 %v3299_v39  ;;  %v1225_v23 = vld [vmem:[%s4948_s4 + $0x90] sm:$0xff]  ;;  %v2843_v39 = vld [vmem:[%s4949_s5 + $0xe0] sm:$0xff] }
 0x13f   : > { %v1105_v46 = vadd.f32 %v1095_v25, %v1075_v45  ;;  %v3335_v25 = vpack.c.bf16 %v1226_v24, %v1225_v23  ;;  %v3343_v43 = vpack.c.bf16 %v2843_v39, %v2841_v38  ;;  %v3345_v45 = vpack.c.bf16 %v2848_v41, %v2846_v40  ;;  %v1324_v24 = vld [vmem:[%s4949_s5 + $0x40] sm:$0xff]  ;;  %v1334_v38 = vld [vmem:[%s4949_s5 + $0x90] sm:$0xff]  ;;  %v1337_v40 = vld [vmem:[%s4949_s5 + $0xa8] sm:$0xf] }
 0x140   : > { %v1112_v48 = vmax.f32 %v1104_v44, 0.0  ;;  %v3365_v23 = vpack.c.bf16 %v1327_v18, %v1325_v17  ;;  %v2868_v41 = vld [vmem:[%s4949_s5 + $0x168] sm:$0xff]  ;;  %v2898_v17 = vld [vmem:[%s4949_s5 + $0x238] sm:$0xff] }
 0x141   : > { %v1113_v50 = vmax.f32 %v1105_v46, 0.0  ;;  %v2845_v46 = vld [vmem:[%s4949_s5 + $0xf0] sm:$0xff]  ;;  %v2900_v18 = vld [vmem:[%s4949_s5 + $0x248] sm:$0xff] }
 0x142   : > { %v3304_v51 = vpack.c.bf16 %v1112_v48, %v1110_v47  ;;  %v2847_v47 = vld [vmem:[%s4949_s5 + $0x100] sm:$0xff] }
 0x143   : > { %v3301_v52 = vpack.c.bf16 %v1113_v50, %v1111_v49  ;;  %v3347_v48 = vpack.c.bf16 %v2847_v47, %v2845_v46  ;;  %v2850_v49 = vld [vmem:[%s4949_s5 + $0x118] sm:$0xff]  ;;  %v2852_v50 = vld [vmem:[%s4949_s5 + $0x128] sm:$0xff]  ;;  %v1336_v47 = vld [vmem:[%s4949_s5 + $0xa0] sm:$0xf] }
 0x144   : > { %v2874_v46 = vld [vmem:[%s4949_s5 + $0x198] sm:$0xff] }
 0x145   : > { %3303 = vmatprep.subr.msk.bf16.mxu1 %vm3302_vm3, %v3301_v52  ;;  %v2849_v52 = vld [vmem:[%s4949_s5 + $0x110] sm:$0xff] }
 0x146   : > { %3306 = vmatpush1.bf16.msk.msra.mxu1 %vm3302_vm3, %v3304_v51  ;;  %v3349_v51 = vpack.c.bf16 %v2852_v50, %v2850_v49  ;;  %v3351_v54 = vpack.c.bf16 %v2851_v53, %v2849_v52  ;;  %v2873_v52 = vld [vmem:[%s4949_s5 + $0x190] sm:$0xff] }
 0x147   : > { %3307 = vmatprep.subr.bf16.mxu1 %v3741_v57 }
 0x149   : > { %2833 = vmatmul.mubr.msk.f32.vlgmr.msra.gmra.mrb[0].mxu1 %vm1116_vm4, %v1114_v55  ;;  %v2854_v55 = vld [vmem:[%s4949_s5 + $0x138] sm:$0xff] }
 0x14a   : > { %1200 = vmatprep.mubr.f32.mxu1 %v3739_v7  ;;  %3309 = vmatpush1.bf16.msra.mxu1 %v3308_v56  ;;  %v2856_v56 = vld [vmem:[%s4949_s5 + $0x148] sm:$0xff] }
 0x14b   : > { %3310 = vmatprep.subr.bf16.mxu1 %v3741_v57  ;;  %v3353_v58 = vpack.c.bf16 %v2856_v56, %v2854_v55  ;;  %v2878_v55 = vld [vmem:[%s4949_s5 + $0x1b8] sm:$0xff] }
 0x14d   : > { %2834 = vmatmul.mubr.msk.f32.gmra.mrb[2].mxu1 %vm1116_vm4, %v1115_v60  ;;  %v2855_v60 = vld [vmem:[%s4949_s5 + $0x140] sm:$0xff] }
 0x14e   : > { %3312 = vmatpush1.bf16.msra.mxu1 %v3311_v61  ;;  %v3355_v61 = vpack.c.bf16 %v2855_v60, %v2853_v59  ;;  %v2875_v59 = vld [vmem:[%s4949_s5 + $0x1a0] sm:$0xff]  ;;  %v2877_v60 = vld [vmem:[%s4949_s5 + $0x1b0] sm:$0xff] }
 0x14f   : > { %3313 = vmatprep.subr.bf16.mxu1 %v3741_v57 }
 0x152   : > { %3315 = vmatpush1.bf16.msra.mxu1 %v3314_v0  ;;  %v1319_v0 = vld [vmem:[%s4949_s5 + $0x18] sm:$0xff] }
 0x153   : > { %3316 = vmatprep.subr.bf16.mxu1 %v3741_v57  ;;  %v3357_v2 = vpack.c.bf16 %v1319_v0, %v1317_v63  ;;  %v2882_v63 = vld [vmem:[%s4949_s5 + $0x1d8] sm:$0xff]  ;;  %v3387_v0 = vpack.c.bf16 %v2877_v60, %v2875_v59 }
 0x156   : > { %3318 = vmatpush1.bf16.msra.mxu1 %v3317_v3 }
 0x157   : > { %3319 = vmatprep.subr.bf16.mxu1 %v3741_v57 }
 0x15a   : > { %3321 = vmatpush1.bf16.msra.mxu1 %v3320_v6 }
 0x15b   : > { %3322 = vmatprep.subr.bf16.mxu1 %v3741_v57 }
 0x15e   : > { %3324 = vmatpush1.bf16.msra.mxu1 %v3323_v10  ;;  %v1321_v10 = vld [vmem:[%s4949_s5 + $0x28] sm:$0xff] }
 0x15f   : > { %3325 = vmatprep.subr.bf16.mxu1 %v3741_v57 }
 0x162   : > { %3327 = vmatpush1.bf16.msra.mxu1 %v3326_v13  ;;  %v3361_v13 = vpack.c.bf16 %v1323_v11, %v1321_v10  ;;  %v2885_v10 = vld [vmem:[%s4949_s5 + $0x1f0] sm:$0xff] }
 0x163   : > { %3328 = vmatprep.subr.bf16.mxu1 %v3741_v57  ;;  %v3395_v11 = vpack.c.bf16 %v2885_v10, %v2883_v9  ;;  %v2934_v9 = vld [vmem:[%s4949_s5 + $0x338] sm:$0xff] }
 0x166   : > { %3330 = vmatpush1.bf16.msra.mxu1 %v3329_v16 }
 0x167   : > { %3331 = vmatprep.subr.bf16.mxu1 %v3741_v57 }
 0x16a   : > { %3333 = vmatpush1.bf16.msra.mxu1 %v3332_v21  ;;  %v3363_v21 = vpack.c.bf16 %v1322_v15, %v1320_v14  ;;  %v2896_v14 = vld [vmem:[%s4949_s5 + $0x228] sm:$0xff]  ;;  %v2893_v15 = vld [vmem:[%s4949_s5 + $0x210] sm:$0xff] }
 0x16b   : > { %3334 = vmatprep.subr.bf16.mxu1 %v3741_v57 }
 0x16e   : > { %3336 = vmatpush1.bf16.msra.mxu1 %v3335_v25  ;;  %v1326_v25 = vld [vmem:[%s4949_s5 + $0x50] sm:$0xff] }
 0x16f   : > { %1275 = vmatprep.subr.mxu1 %v3739_v7 }
 0x172   : > { %1276 = vmatpush1.msra.mxu1 %v1227_v26 }
 0x173   : > { %3338 = vmatprep.subr.bf16.mxu1 %v3337_v29  ;;  %v3367_v29 = vpack.c.bf16 %v1326_v25, %v1324_v24  ;;  %v3401_v25 = vpack.c.bf16 %v2900_v18, %v2898_v17  ;;  %v2935_v18 = vld [vmem:[%s4949_s5 + $0x340] sm:$0xff] }
 0x21c   : > { %v1196_v34 = vpop.f32.mrb[0].mxu1 }
 0x21d   : > { %v1198_v36 = vpop.f32.mrb[1].mxu1 }
 0x21e   : > { %2835 = vmatprep.mubr.msk.f32.mxu1 %vm1228_vm5, %v1198_v36 }
 0x21f   : > { %1300 = vmatmul.mubr.f32.vlgmr.msra.gmra.mrb[4].mxu1 %v1196_v34  ;;  %v1335_v34 = vld [vmem:[%s4949_s5 + $0x98] sm:$0xff] }
 0x220   : > { %v1202_v42 = vpop.f32.mrb[2].mxu1  ;;  %3340 = vmatpush1.bf16.msra.mxu1 %v3339_v35  ;;  %v3371_v35 = vpack.c.bf16 %v1330_v32, %v1328_v31  ;;  %v3373_v36 = vpack.c.bf16 %v1335_v34, %v1333_v33  ;;  %v2901_v33 = vld [vmem:[%s4949_s5 + $0x250] sm:$0xff]  ;;  %v2903_v34 = vld [vmem:[%s4949_s5 + $0x260] sm:$0xff] }
 0x221   : > { %v1204_v44 = vpop.f32.mrb[3].mxu1  ;;  %3342 = vmatprep.subr.bf16.mxu1 %v3341_v37  ;;  %v1332_v37 = vld [vmem:[%s4949_s5 + $0x80] sm:$0xff] }
 0x222   : > { %2836 = vmatprep.mubr.msk.f32.mxu1 %vm1228_vm5, %v1204_v44  ;;  %v3375_v39 = vpack.c.bf16 %v1334_v38, %v1332_v37  ;;  %v2869_v44 = vld [vmem:[%s4949_s5 + $0x170] sm:$0xff]  ;;  %v2908_v37 = vld [vmem:[%s4949_s5 + $0x288] sm:$0xff]  ;;  %v3407_v38 = vpack.c.bf16 %v2903_v34, %v2901_v33 }
 0x223   : > { %1305 = vmatmul.mubr.f32.gmra.mrb[6].mxu1 %v1202_v42  ;;  %v2870_v42 = vld [vmem:[%s4949_s5 + $0x178] sm:$0xff] }
 0x224   : > { %3344 = vmatpush1.bf16.msra.mxu1 %v3343_v43  ;;  %1439 = vmatprep.mubr.f32.mxu1 %v3739_v7  ;;  %v2867_v43 = vld [vmem:[%s4949_s5 + $0x160] sm:$0xff] }
 0x225   : > { %3346 = vmatprep.subr.bf16.mxu1 %v3345_v45  ;;  %v2872_v45 = vld [vmem:[%s4949_s5 + $0x188] sm:$0xff]  ;;  %v3379_v49 = vpack.c.bf16 %v2869_v44, %v2867_v43 }
 0x226   : > { %v3381_v50 = vpack.c.bf16 %v2874_v46, %v2872_v45  ;;  %v2912_v43 = vld [vmem:[%s4949_s5 + $0x2a8] sm:$0xff]  ;;  %v2909_v46 = vld [vmem:[%s4949_s5 + $0x290] sm:$0xff] }
 0x228   : > { %3348 = vmatpush1.bf16.msra.mxu1 %v3347_v48  ;;  %v3377_v48 = vpack.c.bf16 %v2870_v42, %v2868_v41  ;;  %v2907_v41 = vld [vmem:[%s4949_s5 + $0x280] sm:$0xff]  ;;  %v2910_v42 = vld [vmem:[%s4949_s5 + $0x298] sm:$0xff] }
 0x229   : > { %3350 = vmatprep.subr.bf16.mxu1 %v3349_v51  ;;  %v2871_v51 = vld [vmem:[%s4949_s5 + $0x180] sm:$0xff]  ;;  %v3413_v45 = vpack.c.bf16 %v2912_v43, %v2910_v42 }
 0x22a   : > { %v3383_v56 = vpack.c.bf16 %v2873_v52, %v2871_v51  ;;  %v2922_v51 = vld [vmem:[%s4949_s5 + $0x2d8] sm:$0xff]  ;;  %v2919_v52 = vld [vmem:[%s4949_s5 + $0x2c0] sm:$0xff] }
 0x22c   : > { %3352 = vmatpush1.bf16.msra.mxu1 %v3351_v54  ;;  %v2876_v54 = vld [vmem:[%s4949_s5 + $0x1a8] sm:$0xff] }
 0x22d   : > { %3354 = vmatprep.subr.bf16.mxu1 %v3353_v58  ;;  %v3385_v58 = vpack.c.bf16 %v2878_v55, %v2876_v54  ;;  %v2924_v54 = vld [vmem:[%s4949_s5 + $0x2e8] sm:$0xff]  ;;  %v2926_v55 = vld [vmem:[%s4949_s5 + $0x2f8] sm:$0xff] }
 0x22e   : > { %v3421_v60 = vpack.c.bf16 %v2926_v55, %v2924_v54  ;;  %v2006_v55 = vld [vmem:[%s4952_s8 + $0x40] sm:$0xff] }
 0x230   : > { %3356 = vmatpush1.bf16.msra.mxu1 %v3355_v61 }
 0x231   : > { %2859 = vmatprep.subr.msk.mxu1 %vm1123_vm1, %v2858_v62  ;;  %v2880_v62 = vld [vmem:[%s4949_s5 + $0x1c8] sm:$0xff] }
 0x234   : > { %2860 = vmatpush1.msk.msra.mxu1 %vm1123_vm1, %v2857_v1  ;;  %v3389_v1 = vpack.c.bf16 %v2882_v63, %v2880_v62  ;;  %v2925_v62 = vld [vmem:[%s4949_s5 + $0x2f0] sm:$0xff] }
 0x235   : > { %3358 = vmatprep.subr.bf16.mxu1 %v3357_v2  ;;  %v2879_v2 = vld [vmem:[%s4949_s5 + $0x1c0] sm:$0xff] }
 0x2f2   : > { %v1301_v3 = vpop.f32.mrb[4].mxu1 }
 0x2f3   : > { %1311 = vst.msk [vmem:[#allocation2] sm:$0xff] %vm1310_vm6, %v1301_v3  ;;  %v1303_v4 = vpop.f32.mrb[5].mxu1  ;;  %v2881_v3 = vld [vmem:[%s4949_s5 + $0x1d0] sm:$0xff] }
 0x2f4   : > { %v2884_v4 = vld [vmem:[%s4949_s5 + $0x1e8] sm:$0xff] }
 0x2f6   : > { %v1306_v5 = vpop.f32.mrb[6].mxu1 }
 0x2f7   : > { %1313 = vst.msk [vmem:[#allocation2 + $0x8] sm:$0x3f] %vm1312_vm7, %v1306_v5  ;;  %v1308_v6 = vpop.f32.mrb[7].mxu1  ;;  %v2886_v5 = vld [vmem:[%s4949_s5 + $0x1f8] sm:$0xff] }
 0x2f8   : > { %v3391_v6 = vpack.c.bf16 %v2881_v3, %v2879_v2  ;;  %v3393_v8 = vpack.c.bf16 %v2886_v5, %v2884_v4  ;;  %v2927_v4 = vld [vmem:[%s4949_s5 + $0x300] sm:$0xff]  ;;  %v2929_v5 = vld [vmem:[%s4949_s5 + $0x310] sm:$0xff] }
 0x2f9   : > { %v3427_v10 = vpack.c.bf16 %v2929_v5, %v2927_v4  ;;  %v2014_v4 = vld [vmem:[%s4952_s8 + $0x80] sm:$0xff]  ;;  %v2015_v5 = vld [vmem:[%s4952_s8 + $0x88] sm:$0xff] }
 0x2fa   : > { %v1314_v53 = vld [vmem:[#allocation2] sm:$0xff] }
 0x2fe   : > { %v1338_v16 = vld [vmem:[#allocation2 + $0x1] sm:$0xff]  ;;  %v1339_v26 = vld [vmem:[#allocation2 + $0x9] sm:$0x3] }
 0x2ff   : > { %2861 = vmatmul.mubr.msk.f32.vlgmr.msra.gmra.mrb[8].mxu1 %vm1310_vm6, %v1338_v16  ;;  %v1315_v61 = vld [vmem:[#allocation2 + $0x8] sm:$0x3]  ;;  %v2895_v16 = vld [vmem:[%s4949_s5 + $0x220] sm:$0xff] }
 0x300   : > { %3360 = vmatpush1.bf16.msra.mxu1 %v3359_v12  ;;  %1445 = vmatprep.mubr.f32.mxu1 %v3739_v7  ;;  %v2888_v12 = vld [vmem:[%s4949_s5 + $0x208] sm:$0xf]  ;;  %v3399_v24 = vpack.c.bf16 %v2895_v16, %v2893_v15  ;;  %v2938_v15 = vld [vmem:[%s4949_s5 + $0x358] sm:$0xff] }
 0x301   : > { %3362 = vmatprep.subr.bf16.mxu1 %v3361_v13  ;;  %v2894_v13 = vld [vmem:[%s4949_s5 + $0x218] sm:$0xff]  ;;  %v1541_v28 = vld [vmem:[#allocation2 + $0x2] sm:$0xff] }
 0x302   : > { %v1659_v63 = vld [vmem:[#allocation2 + $0x3] sm:$0xff] }
 0x303   : > { %2862 = vmatmul.mubr.msk.f32.gmra.mrb[10].mxu1 %vm1310_vm6, %v1339_v26  ;;  %v2897_v26 = vld [vmem:[%s4949_s5 + $0x230] sm:$0xff] }
 0x304   : > { %3364 = vmatpush1.bf16.msra.mxu1 %v3363_v21  ;;  %1528 = vmatprep.mubr.f32.mxu1 %v3739_v7  ;;  %v2887_v21 = vld [vmem:[%s4949_s5 + $0x200] sm:$0xf]  ;;  %v3403_v31 = vpack.c.bf16 %v2899_v27, %v2897_v26  ;;  %v1777_v26 = vld [vmem:[#allocation2 + $0x4] sm:$0xff]  ;;  %v1778_v27 = vld [vmem:[#allocation2 + $0xc] sm:$0x3] }
 0x305   : > { %3366 = vmatprep.subr.bf16.mxu1 %v3365_v23  ;;  %v3397_v23 = vpack.c.bf16 %v2896_v14, %v2894_v13  ;;  %v2933_v13 = vld [vmem:[%s4949_s5 + $0x330] sm:$0xff]  ;;  %v2936_v14 = vld [vmem:[%s4949_s5 + $0x348] sm:$0xff] }
 0x306   : > { %v3433_v17 = vpack.c.bf16 %v2938_v15, %v2936_v14  ;;  %v2963_v14 = vld [vmem:[%s4953_s9 + $0xb0] sm:$0xff]  ;;  %v2964_v15 = vld [vmem:[%s4953_s9 + $0xb8] sm:$0xff] }
 0x308   : > { %3368 = vmatpush1.bf16.msra.mxu1 %v3367_v29  ;;  %v2902_v29 = vld [vmem:[%s4949_s5 + $0x258] sm:$0xff] }
 0x309   : > { %3370 = vmatprep.subr.bf16.mxu1 %v3369_v30  ;;  %v2904_v30 = vld [vmem:[%s4949_s5 + $0x268] sm:$0xff] }
 0x30a   : > { %v3405_v32 = vpack.c.bf16 %v2904_v30, %v2902_v29 }
 0x30c   : > { %3372 = vmatpush1.bf16.msra.mxu1 %v3371_v35  ;;  %v1542_v35 = vld [vmem:[#allocation2 + $0xa] sm:$0x3] }
 0x30d   : > { %3374 = vmatprep.subr.bf16.mxu1 %v3373_v36  ;;  %v2906_v36 = vld [vmem:[%s4949_s5 + $0x278] sm:$0xff] }
 0x310   : > { %3376 = vmatpush1.bf16.msra.mxu1 %v3375_v39  ;;  %v3409_v39 = vpack.c.bf16 %v2908_v37, %v2906_v36 }
 0x311   : > { %2863 = vmatprep.subr.msk.mxu1 %vm1123_vm1, %v1337_v40  ;;  %v2905_v40 = vld [vmem:[%s4949_s5 + $0x270] sm:$0xff] }
 0x312   : > { %v3411_v44 = vpack.c.bf16 %v2907_v41, %v2905_v40 }
 0x314   : > { %2864 = vmatpush1.msk.msra.mxu1 %vm1123_vm1, %v1336_v47  ;;  %v2911_v47 = vld [vmem:[%s4949_s5 + $0x2a0] sm:$0xff] }
 0x315   : > { %2865 = vmatmul.mubr.msk.f32.vlgmr.msra.gmra.mrb[8].mxu1 %vm1310_vm6, %v1314_v53  ;;  %3378 = vmatprep.subr.bf16.mxu1 %v3377_v48  ;;  %v3415_v48 = vpack.c.bf16 %v2911_v47, %v2909_v46  ;;  %v2921_v53 = vld [vmem:[%s4949_s5 + $0x2d0] sm:$0xff]  ;;  %v2001_v47 = vld [vmem:[%s4952_s8 + $0x18] sm:$0xff] }
 0x316   : > { %3380 = vmatpush1.bf16.msra.mxu1 %v3379_v49  ;;  %1534 = vmatprep.mubr.f32.mxu1 %v3739_v7  ;;  %v2914_v49 = vld [vmem:[%s4949_s5 + $0x2b8] sm:$0xf]  ;;  %v3419_v59 = vpack.c.bf16 %v2921_v53, %v2919_v52  ;;  %v2000_v46 = vld [vmem:[%s4952_s8 + $0x10] sm:$0xff] }
 0x317   : > { %3382 = vmatprep.subr.bf16.mxu1 %v3381_v50  ;;  %v2920_v50 = vld [vmem:[%s4949_s5 + $0x2c8] sm:$0xff]  ;;  %v2004_v52 = vld [vmem:[%s4952_s8 + $0x30] sm:$0xff]  ;;  %v2005_v53 = vld [vmem:[%s4952_s8 + $0x38] sm:$0xff] }
 0x318   : > { %v3453_v54 = vpack.c.bf16 %v2005_v53, %v2004_v52  ;;  %v2097_v52 = vld [vmem:[%s4953_s9 + $0x18] sm:$0xff]  ;;  %v2985_v53 = vld [vmem:[%s4953_s9 + $0x150] sm:$0xff] }
 0x319   : > { %2866 = vmatmul.mubr.msk.f32.gmra.mrb[10].mxu1 %vm1310_vm6, %v1315_v61  ;;  %v2923_v61 = vld [vmem:[%s4949_s5 + $0x2e0] sm:$0xff] }
 0x31a   : > { %3384 = vmatpush1.bf16.msra.mxu1 %v3383_v56  ;;  %1642 = vmatprep.mubr.f32.mxu1 %v3739_v7  ;;  %v2913_v56 = vld [vmem:[%s4949_s5 + $0x2b0] sm:$0xf]  ;;  %v3423_v2 = vpack.c.bf16 %v2925_v62, %v2923_v61  ;;  %v2010_v62 = vld [vmem:[%s4952_s8 + $0x60] sm:$0xff] }
 0x31b   : > { %3386 = vmatprep.subr.bf16.mxu1 %v3385_v58  ;;  %v3417_v58 = vpack.c.bf16 %v2922_v51, %v2920_v50  ;;  %v2003_v50 = vld [vmem:[%s4952_s8 + $0x28] sm:$0xff] }
 0x31e   : > { %3388 = vmatpush1.bf16.msra.mxu1 %v3387_v0  ;;  %v2928_v0 = vld [vmem:[%s4949_s5 + $0x308] sm:$0xff] }
 0x31f   : > { %3390 = vmatprep.subr.bf16.mxu1 %v3389_v1  ;;  %v2930_v1 = vld [vmem:[%s4949_s5 + $0x318] sm:$0xff] }
 0x320   : > { %v3425_v3 = vpack.c.bf16 %v2930_v1, %v2928_v0  ;;  %v2012_v1 = vld [vmem:[%s4952_s8 + $0x70] sm:$0xff] }
 0x322   : > { %3392 = vmatpush1.bf16.msra.mxu1 %v3391_v6  ;;  %v1660_v6 = vld [vmem:[#allocation2 + $0xb] sm:$0x3] }
 0x323   : > { %3394 = vmatprep.subr.bf16.mxu1 %v3393_v8  ;;  %v2932_v8 = vld [vmem:[%s4949_s5 + $0x328] sm:$0xff] }
 0x326   : > { %3396 = vmatpush1.bf16.msra.mxu1 %v3395_v11  ;;  %v3429_v11 = vpack.c.bf16 %v2934_v9, %v2932_v8  ;;  %v2016_v8 = vld [vmem:[%s4952_s8 + $0x90] sm:$0xff]  ;;  %v2017_v9 = vld [vmem:[%s4952_s8 + $0x98] sm:$0xff] }
 0x327   : > { %2889 = vmatprep.subr.msk.mxu1 %vm1123_vm1, %v2888_v12  ;;  %v2931_v12 = vld [vmem:[%s4949_s5 + $0x320] sm:$0xff] }
 0x328   : > { %v3431_v16 = vpack.c.bf16 %v2933_v13, %v2931_v12  ;;  %v2962_v12 = vld [vmem:[%s4953_s9 + $0xa8] sm:$0xff] }
 0x32a   : > { %2890 = vmatpush1.msk.msra.mxu1 %vm1123_vm1, %v2887_v21  ;;  %v2937_v21 = vld [vmem:[%s4949_s5 + $0x350] sm:$0xff] }
 0x32b   : > { %2891 = vmatmul.mubr.msk.f32.vlgmr.msra.gmra.mrb[8].mxu1 %vm1310_vm6, %v1541_v28  ;;  %3398 = vmatprep.subr.bf16.mxu1 %v3397_v23  ;;  %v3435_v23 = vpack.c.bf16 %v2937_v21, %v2935_v18  ;;  %v1895_v28 = vld [vmem:[%s4950_s6] sm:$0x3]  ;;  %v2966_v18 = vld [vmem:[%s4953_s9 + $0xc8] sm:$0xff] }
 0x32c   : > { %3400 = vmatpush1.bf16.msra.mxu1 %v3399_v24  ;;  %1648 = vmatprep.mubr.f32.mxu1 %v3739_v7  ;;  %v2940_v24 = vld [vmem:[%s4949_s5 + $0x368] sm:$0xf]  ;;  %v1900_v29 = vrot.slane %v1895_v28, %v1090_v20 }
 0x32d   : > { %3402 = vmatprep.subr.bf16.mxu1 %v3401_v25  ;;  %v2939_v25 = vld [vmem:[%s4949_s5 + $0x360] sm:$0xf] }
 0x32f   : > { %2892 = vmatmul.mubr.msk.f32.gmra.mrb[10].mxu1 %vm1310_vm6, %v1542_v35 }
 0x330   : > { %3404 = vmatpush1.bf16.msra.mxu1 %v3403_v31  ;;  %1760 = vmatprep.mubr.f32.mxu1 %v3739_v7  ;;  %v1904_v31 = vrot.slane %v1895_v28, %v1094_v22  ;;  %v1999_v22 = vld [vmem:[%s4952_s8 + $0x8] sm:$0xff]  ;;  %v2951_v28 = vld [vmem:[%s4953_s9 + $0x60] sm:$0xff] }
 0x331   : > { %3406 = vmatprep.subr.bf16.mxu1 %v3405_v32 }
 0x334   : > { %3408 = vmatpush1.bf16.msra.mxu1 %v3407_v38 }
 0x335   : > { %3410 = vmatprep.subr.bf16.mxu1 %v3409_v39 }
 0x338   : > { %3412 = vmatpush1.bf16.msra.mxu1 %v3411_v44  ;;  %v1915_v44 = vld [vmem:[%s4951_s7] sm:$0x1f] }
 0x339   : > { %3414 = vmatprep.subr.bf16.mxu1 %v3413_v45  ;;  %v3444_v45 = vpack.c.bf16 %v1999_v22, %v1998_v19 }
 0x33c   : > { %3416 = vmatpush1.bf16.msra.mxu1 %v3415_v48  ;;  %v3447_v48 = vpack.c.bf16 %v2001_v47, %v2000_v46  ;;  %v2095_v46 = vld [vmem:[%s4953_s9 + $0x8] sm:$0xff]  ;;  %v2983_v47 = vld [vmem:[%s4953_s9 + $0x140] sm:$0xff] }
 0x33d   : > { %2915 = vmatprep.subr.msk.mxu1 %vm1123_vm1, %v2914_v49  ;;  %v2002_v49 = vld [vmem:[%s4952_s8 + $0x20] sm:$0xff] }
 0x33e   : > { %v3450_v51 = vpack.c.bf16 %v2003_v50, %v2002_v49 }
 0x340   : > { %2916 = vmatpush1.msk.msra.mxu1 %vm1123_vm1, %v2913_v56  ;;  %v2007_v56 = vld [vmem:[%s4952_s8 + $0x48] sm:$0xff] }
 0x341   : > { %2917 = vmatmul.mubr.msk.f32.vlgmr.msra.gmra.mrb[8].mxu1 %vm1310_vm6, %v1659_v63  ;;  %3418 = vmatprep.subr.bf16.mxu1 %v3417_v58  ;;  %v3456_v58 = vpack.c.bf16 %v2007_v56, %v2006_v55  ;;  %v2011_v63 = vld [vmem:[%s4952_s8 + $0x68] sm:$0xff] }
 0x342   : > { %3420 = vmatpush1.bf16.msra.mxu1 %v3419_v59  ;;  %1766 = vmatprep.mubr.f32.mxu1 %v3739_v7  ;;  %v2008_v59 = vld [vmem:[%s4952_s8 + $0x50] sm:$0xff]  ;;  %v3462_v0 = vpack.c.bf16 %v2011_v63, %v2010_v62  ;;  %v2987_v62 = vld [vmem:[%s4953_s9 + $0x160] sm:$0xff]  ;;  %v2988_v63 = vld [vmem:[%s4953_s9 + $0x168] sm:$0xff] }
 0x343   : > { %3422 = vmatprep.subr.bf16.mxu1 %v3421_v60  ;;  %v2009_v60 = vld [vmem:[%s4952_s8 + $0x58] sm:$0xff] }
 0x344   : > { %v3459_v61 = vpack.c.bf16 %v2009_v60, %v2008_v59  ;;  %v2098_v60 = vld [vmem:[%s4953_s9 + $0x20] sm:$0xff] }
 0x345   : > { %2918 = vmatmul.mubr.msk.f32.gmra.mrb[10].mxu1 %vm1310_vm6, %v1660_v6  ;;  %v3468_v6 = vpack.c.bf16 %v2015_v5, %v2014_v4  ;;  %v2989_v4 = vld [vmem:[%s4953_s9 + $0x170] sm:$0xff]  ;;  %v2990_v5 = vld [vmem:[%s4953_s9 + $0x178] sm:$0xff] }
 0x346   : > { %3424 = vmatpush1.bf16.msra.mxu1 %v3423_v2  ;;  %1878 = vmatprep.mubr.f32.mxu1 %v3739_v7  ;;  %v2013_v2 = vld [vmem:[%s4952_s8 + $0x78] sm:$0xff] }
 0x347   : > { %3426 = vmatprep.subr.bf16.mxu1 %v3425_v3  ;;  %v3465_v3 = vpack.c.bf16 %v2013_v2, %v2012_v1  ;;  %v3540_v1 = vpack.c.bf16 %v2988_v63, %v2987_v62  ;;  %v2100_v2 = vld [vmem:[%s4953_s9 + $0x30] sm:$0xff]  ;;  %v2619_v62 = vld [vmem:[%s4957_s13 + $0x20] sm:$0xff]  ;;  %v2620_v63 = vld [vmem:[%s4957_s13 + $0x28] sm:$0xff] }
 0x34a   : > { %3428 = vmatpush1.bf16.msra.mxu1 %v3427_v10  ;;  %v3471_v10 = vpack.c.bf16 %v2017_v9, %v2016_v8  ;;  %v3543_v8 = vpack.c.bf16 %v2990_v5, %v2989_v4  ;;  %v2102_v9 = vld [vmem:[%s4953_s9 + $0x40] sm:$0xff] }
 0x34b   : > { %3430 = vmatprep.subr.bf16.mxu1 %v3429_v11  ;;  %v2961_v11 = vld [vmem:[%s4953_s9 + $0xa0] sm:$0xff] }
 0x34c   : > { %v3504_v13 = vpack.c.bf16 %v2962_v12, %v2961_v11  ;;  %v2991_v11 = vld [vmem:[%s4953_s9 + $0x180] sm:$0xff]  ;;  %v2992_v12 = vld [vmem:[%s4953_s9 + $0x188] sm:$0xff] }
 0x34e   : > { %3432 = vmatpush1.bf16.msra.mxu1 %v3431_v16  ;;  %v3507_v16 = vpack.c.bf16 %v2964_v15, %v2963_v14  ;;  %v3546_v14 = vpack.c.bf16 %v2992_v12, %v2991_v11  ;;  %v2972_v15 = vld [vmem:[%s4953_s9 + $0xf0] sm:$0xff] }
 0x34f   : > { %3434 = vmatprep.subr.bf16.mxu1 %v3433_v17  ;;  %v2965_v17 = vld [vmem:[%s4953_s9 + $0xc0] sm:$0xff] }
 0x350   : > { %v3510_v21 = vpack.c.bf16 %v2966_v18, %v2965_v17  ;;  %v2974_v18 = vld [vmem:[%s4953_s9 + $0x100] sm:$0xff] }
 0x352   : > { %3436 = vmatpush1.bf16.msra.mxu1 %v3435_v23  ;;  %v2949_v23 = vld [vmem:[%s4953_s9 + $0x50] sm:$0xff] }
 0x353   : > { %2941 = vmatprep.subr.msk.mxu1 %vm1123_vm1, %v2940_v24  ;;  %v2950_v24 = vld [vmem:[%s4953_s9 + $0x58] sm:$0xff] }
 0x356   : > { %2942 = vmatpush1.msk.msra.mxu1 %vm1123_vm1, %v2939_v25 }
 0x357   : > { %2943 = vmatmul.mubr.msk.f32.vlgmr.msra.gmra.mrb[8].mxu1 %vm1310_vm6, %v1777_v26  ;;  %3503 = vmatprep.subr.bf16.mxu1 %v3741_v57  ;;  %v3474_v26 = vpack.c.bf16 %v2950_v24, %v2949_v23 }
 0x358   : > { %1884 = vmatprep.mubr.f32.mxu1 %v3739_v7  ;;  %3505 = vmatpush3.bf16.msra.mxu1 %v3504_v13 }
 0x359   : > { %3506 = vmatprep.subr.bf16.mxu1 %v3741_v57 }
 0x35b   : > { %2944 = vmatmul.mubr.msk.f32.gmra.mrb[10].mxu1 %vm1310_vm6, %v1778_v27 }
 0x35c   : > { %3508 = vmatpush3.bf16.msra.mxu1 %v3507_v16  ;;  %3150 = vmatprep.mubr.msk.f32.mxu1 %vm3742_vm11, %v3739_v7  ;;  %v2973_v16 = vld [vmem:[%s4953_s9 + $0xf8] sm:$0xff] }
 0x35d   : > { %3509 = vmatprep.subr.bf16.mxu1 %v3741_v57  ;;  %v3519_v17 = vpack.c.bf16 %v2973_v16, %v2972_v15 }
 0x360   : > { %3511 = vmatpush3.bf16.msra.mxu1 %v3510_v21  ;;  %v2975_v21 = vld [vmem:[%s4953_s9 + $0x108] sm:$0xff] }
 0x361   : > { %3512 = vmatprep.subr.bf16.mxu1 %v3741_v57 }
 0x42a   : > { %v1880_v30 = vpop.f32.mrb[8].mxu1 }
 0x42b   : > { %v1882_v32 = vpop.f32.mrb[9].mxu1  ;;  %v1907_v33 = vadd.f32 %v1900_v29, %v1880_v30 }
 0x42c   : > { %v1908_v34 = vadd.f32 %v1904_v31, %v1882_v32  ;;  %v2954_v32 = vld [vmem:[%s4953_s9 + $0x78] sm:$0xff] }
 0x42d   : > { %v1911_v39 = vmax.f32 %v1907_v33, 0.0 }
 0x42e   : > { %v1886_v35 = vpop.f32.mrb[10].mxu1  ;;  %v1912_v41 = vmax.f32 %v1908_v34, 0.0  ;;  %v2955_v34 = vld [vmem:[%s4953_s9 + $0x80] sm:$0xff] }
 0x42f   : > { %v1909_v36 = vadd.f32 %v1900_v29, %v1886_v35  ;;  %v1888_v37 = vpop.f32.mrb[11].mxu1  ;;  %v2952_v29 = vld [vmem:[%s4953_s9 + $0x68] sm:$0xff] }
 0x430   : > { %v1910_v38 = vadd.f32 %v1904_v31, %v1888_v37  ;;  %v3477_v30 = vpack.c.bf16 %v2952_v29, %v2951_v28  ;;  %v2953_v31 = vld [vmem:[%s4953_s9 + $0x70] sm:$0xff]  ;;  %v2956_v35 = vld [vmem:[%s4953_s9 + $0x88] sm:$0xff]  ;;  %v2978_v29 = vld [vmem:[%s4953_s9 + $0x120] sm:$0xff] }
 0x431   : > { %v1913_v40 = vmax.f32 %v1909_v36, 0.0  ;;  %v3480_v33 = vpack.c.bf16 %v2954_v32, %v2953_v31  ;;  %v2967_v36 = vld [vmem:[%s4953_s9 + $0xd0] sm:$0xff]  ;;  %v3483_v37 = vpack.c.bf16 %v2956_v35, %v2955_v34 }
 0x432   : > { %v1914_v42 = vmax.f32 %v1910_v38, 0.0  ;;  %v2968_v38 = vld [vmem:[%s4953_s9 + $0xd8] sm:$0xff]  ;;  %v2980_v32 = vld [vmem:[%s4953_s9 + $0x130] sm:$0xff] }
 0x433   : > { %v3440_v43 = vpack.c.bf16 %v1913_v40, %v1911_v39  ;;  %v3513_v39 = vpack.c.bf16 %v2968_v38, %v2967_v36  ;;  %v2957_v40 = vld [vmem:[%s4953_s9 + $0x90] sm:$0xff]  ;;  %v2524_v36 = vld [vmem:[%s4955_s11] sm:$0xff] }
 0x434   : > { %v3437_v20 = vpack.c.bf16 %v1914_v42, %v1912_v41  ;;  %v2958_v41 = vld [vmem:[%s4953_s9 + $0x98] sm:$0xff]  ;;  %v2969_v42 = vld [vmem:[%s4953_s9 + $0xe0] sm:$0xff] }
 0x435   : > { %3514 = vmatpush3.bf16.msra.mxu1 %v3513_v39  ;;  %v2526_v39 = vld [vmem:[%s4955_s11 + $0x10] sm:$0xff] }
 0x436   : > { %3439 = vmatprep.subr.msk.bf16.mxu0 %vm3438_vm9, %v3437_v20  ;;  %v2970_v20 = vld [vmem:[%s4953_s9 + $0xe8] sm:$0xff]  ;;  %3515 = vmatprep.subr.bf16.mxu1 %v3741_v57 }
 0x437   : > { %3442 = vmatpush1.bf16.msk.msra.mxu0 %vm3438_vm9, %v3440_v43  ;;  %v3486_v43 = vpack.c.bf16 %v2958_v41, %v2957_v40  ;;  %v3516_v19 = vpack.c.bf16 %v2970_v20, %v2969_v42  ;;  %v2527_v40 = vld [vmem:[%s4955_s11 + $0x18] sm:$0xff]  ;;  %v2528_v41 = vld [vmem:[%s4955_s11 + $0x20] sm:$0xff] }
 0x438   : > { %3443 = vmatprep.subr.bf16.mxu0 %v3741_v57  ;;  %v3552_v42 = vpack.c.bf16 %v2527_v40, %v2526_v39 }
 0x439   : > { %3517 = vmatpush3.bf16.msra.mxu1 %v3516_v19  ;;  %v2530_v19 = vld [vmem:[%s4955_s11 + $0x30] sm:$0xff] }
 0x43a   : > { %2947 = vmatmul.mubr.msk.f32.vlgmr.msra.gmra.mrb[8].mxu0 %vm1916_vm10, %v1915_v44  ;;  %3533 = vmatprep.subr.bf16.mxu1 %v3741_v57 }
 0x43b   : > { %3445 = vmatpush1.bf16.msra.mxu0 %v3444_v45  ;;  %v2094_v45 = vld [vmem:[%s4953_s9] sm:$0xff] }
 0x43c   : > { %3446 = vmatprep.subr.bf16.mxu0 %v3741_v57  ;;  %v3489_v49 = vpack.c.bf16 %v2095_v46, %v2094_v45  ;;  %v2532_v45 = vld [vmem:[%s4955_s11 + $0x40] sm:$0xff]  ;;  %v2533_v46 = vld [vmem:[%s4955_s11 + $0x48] sm:$0xff] }
 0x43f   : > { %3448 = vmatpush1.bf16.msra.mxu0 %v3447_v48  ;;  %v2984_v48 = vld [vmem:[%s4953_s9 + $0x148] sm:$0xff] }
 0x440   : > { %3449 = vmatprep.subr.bf16.mxu0 %v3741_v57  ;;  %v3534_v50 = vpack.c.bf16 %v2984_v48, %v2983_v47  ;;  %v3561_v47 = vpack.c.bf16 %v2533_v46, %v2532_v45  ;;  %v2534_v48 = vld [vmem:[%s4955_s11 + $0x50] sm:$0xff] }
 0x443   : > { %3451 = vmatpush1.bf16.msra.mxu0 %v3450_v51  ;;  %v2096_v51 = vld [vmem:[%s4953_s9 + $0x10] sm:$0xff] }
 0x444   : > { %3452 = vmatprep.subr.bf16.mxu0 %v3741_v57 }
 0x447   : > { %3454 = vmatpush1.bf16.msra.mxu0 %v3453_v54  ;;  %v2986_v54 = vld [vmem:[%s4953_s9 + $0x158] sm:$0xff] }
 0x448   : > { %3455 = vmatprep.subr.bf16.mxu0 %v3741_v57  ;;  %v3537_v59 = vpack.c.bf16 %v2986_v54, %v2985_v53  ;;  %v2538_v54 = vld [vmem:[%s4955_s11 + $0x70] sm:$0xff] }
 0x44b   : > { %3457 = vmatpush1.bf16.msra.mxu0 %v3456_v58  ;;  %v3492_v58 = vpack.c.bf16 %v2097_v52, %v2096_v51  ;;  %v2536_v51 = vld [vmem:[%s4955_s11 + $0x60] sm:$0xff]  ;;  %v2537_v52 = vld [vmem:[%s4955_s11 + $0x68] sm:$0xff] }
 0x44c   : > { %3458 = vmatprep.subr.bf16.mxu0 %v3741_v57  ;;  %v3567_v53 = vpack.c.bf16 %v2537_v52, %v2536_v51 }
 0x44f   : > { %3460 = vmatpush1.bf16.msra.mxu0 %v3459_v61  ;;  %v2099_v61 = vld [vmem:[%s4953_s9 + $0x28] sm:$0xff] }
 0x450   : > { %3461 = vmatprep.subr.bf16.mxu0 %v3741_v57 }
 0x453   : > { %3463 = vmatpush1.bf16.msra.mxu0 %v3462_v0  ;;  %v3495_v0 = vpack.c.bf16 %v2099_v61, %v2098_v60  ;;  %v2618_v60 = vld [vmem:[%s4957_s13 + $0x18] sm:$0xff] }
 0x454   : > { %3464 = vmatprep.subr.bf16.mxu0 %v3741_v57 }
 0x457   : > { %3466 = vmatpush1.bf16.msra.mxu0 %v3465_v3  ;;  %v2101_v3 = vld [vmem:[%s4953_s9 + $0x38] sm:$0xff] }
 0x458   : > { %3467 = vmatprep.subr.bf16.mxu0 %v3741_v57 }
 0x45b   : > { %3469 = vmatpush1.bf16.msra.mxu0 %v3468_v6  ;;  %v3498_v6 = vpack.c.bf16 %v2101_v3, %v2100_v2  ;;  %v2622_v2 = vld [vmem:[%s4957_s13 + $0x38] sm:$0xff] }
 0x45c   : > { %3470 = vmatprep.subr.bf16.mxu0 %v3741_v57 }
 0x45f   : > { %3472 = vmatpush1.bf16.msra.mxu0 %v3471_v10  ;;  %v2103_v10 = vld [vmem:[%s4953_s9 + $0x48] sm:$0xff] }
 0x460   : > { %3473 = vmatprep.subr.bf16.mxu0 %v3741_v57  ;;  %v3501_v13 = vpack.c.bf16 %v2103_v10, %v2102_v9 }
 0x50d   : > { %v1993_v25 = vpop.f32.mrb[8].mxu0 }
 0x50e   : > { %v1995_v27 = vpop.f32.mrb[9].mxu0 }
 0x50f   : > { %2948 = vmatprep.mubr.msk.f32.mxu0 %vm517_vm0, %v1995_v27  ;;  %v2977_v27 = vld [vmem:[%s4953_s9 + $0x118] sm:$0xff] }
 0x510   : > { %2086 = vmatmul.mubr.f32.vlgmr.msra.gmra.mrb[10].mxu0 %v1993_v25  ;;  %v3522_v25 = vpack.c.bf16 %v2975_v21, %v2974_v18  ;;  %v2521_v18 = vld [vmem:[%s4954_s10] sm:$0x1] }
 0x511   : > { %3475 = vmatpush3.bf16.msra.mxu0 %v3474_v26  ;;  %3104 = vmatprep.mubr.msk.f32.mxu0 %vm3742_vm11, %v3739_v7  ;;  %v2976_v26 = vld [vmem:[%s4953_s9 + $0x110] sm:$0xff] }
 0x512   : > { %3476 = vmatprep.subr.bf16.mxu0 %v3741_v57  ;;  %v3525_v28 = vpack.c.bf16 %v2977_v27, %v2976_v26  ;;  %v2625_v27 = vld [vmem:[%s4957_s13 + $0x50] sm:$0xf] }
 0x515   : > { %3478 = vmatpush3.bf16.msra.mxu0 %v3477_v30  ;;  %v2979_v30 = vld [vmem:[%s4953_s9 + $0x128] sm:$0xff] }
 0x516   : > { %3479 = vmatprep.subr.bf16.mxu0 %v3741_v57  ;;  %v3528_v31 = vpack.c.bf16 %v2979_v30, %v2978_v29 }
 0x519   : > { %3481 = vmatpush3.bf16.msra.mxu0 %v3480_v33  ;;  %v2981_v33 = vld [vmem:[%s4953_s9 + $0x138] sm:$0xff] }
 0x51a   : > { %3482 = vmatprep.subr.bf16.mxu0 %v3741_v57  ;;  %v3531_v34 = vpack.c.bf16 %v2981_v33, %v2980_v32 }
 0x51d   : > { %3484 = vmatpush3.bf16.msra.mxu0 %v3483_v37  ;;  %v2525_v37 = vld [vmem:[%s4955_s11 + $0x8] sm:$0xff] }
 0x51e   : > { %3485 = vmatprep.subr.bf16.mxu0 %v3741_v57  ;;  %v3549_v38 = vpack.c.bf16 %v2525_v37, %v2524_v36 }
 0x521   : > { %3487 = vmatpush3.bf16.msra.mxu0 %v3486_v43  ;;  %v2529_v43 = vld [vmem:[%s4955_s11 + $0x28] sm:$0xff] }
 0x522   : > { %3488 = vmatprep.subr.bf16.mxu0 %v3741_v57  ;;  %v3555_v20 = vpack.c.bf16 %v2529_v43, %v2528_v41 }
 0x5e3   : > { %v2087_v22 = vpop.f32.mrb[10].mxu0 }
 0x5e4   : > { %2092 = vst.msk [vmem:[#allocation3] sm:$0x1f] %vm2091_vm12, %v2087_v22  ;;  %v2089_v44 = vpop.f32.mrb[11].mxu0  ;;  %v2531_v22 = vld [vmem:[%s4955_s11 + $0x38] sm:$0xff] }
 0x5e5   : > { %v3558_v44 = vpack.c.bf16 %v2531_v22, %v2530_v19 }
 0x5eb   : > { %v2104_v55 = vld [vmem:[#allocation3 + $0x1] sm:$0x1]  ;;  %v2263_v56 = vld [vmem:[#allocation3 + $0x2] sm:$0x1]  ;;  %v2093_v23 = vld [vmem:[#allocation3] sm:$0x1] }
 0x5ec   : > { %3105 = vmatmul.mubr.msk.f32.vlgmr.msra.gmra.mrb[12].mxu0 %vm2116_vm13, %v2104_v55  ;;  %3151 = vmatmul.mubr.msk.f32.vlgmr.msra.gmra.mrb[12].mxu1 %vm2116_vm13, %v2263_v56  ;;  %v2435_v24 = vld [vmem:[#allocation3 + $0x4] sm:$0x1]  ;;  %v2349_v35 = vld [vmem:[#allocation3 + $0x3] sm:$0x1]  ;;  %v2615_v55 = vld [vmem:[%s4957_s13] sm:$0xff] }
 0x5ed   : > { %3490 = vmatpush3.bf16.msra.mxu0 %v3489_v49  ;;  %3535 = vmatpush3.bf16.msra.mxu1 %v3534_v50  ;;  %v2535_v49 = vld [vmem:[%s4955_s11 + $0x58] sm:$0xff]  ;;  %v2616_v56 = vld [vmem:[%s4957_s13 + $0x8] sm:$0xff] }
 0x5ee   : > { %3491 = vmatprep.subr.bf16.mxu0 %v3741_v57  ;;  %3536 = vmatprep.subr.bf16.mxu1 %v3741_v57  ;;  %v3564_v50 = vpack.c.bf16 %v2535_v49, %v2534_v48 }
 0x5ef   : > { %3127 = vmatprep.mubr.msk.f32.mxu0 %vm3742_vm11, %v3739_v7  ;;  %3196 = vmatprep.mubr.msk.f32.mxu1 %vm3742_vm11, %v3739_v7 }
 0x5f1   : > { %3493 = vmatpush3.bf16.msra.mxu0 %v3492_v58  ;;  %3538 = vmatpush3.bf16.msra.mxu1 %v3537_v59  ;;  %v2617_v58 = vld [vmem:[%s4957_s13 + $0x10] sm:$0xff]  ;;  %v3570_v59 = vpack.c.bf16 %v2616_v56, %v2615_v55 }
 0x5f2   : > { %3494 = vmatprep.subr.bf16.mxu0 %v3741_v57  ;;  %3539 = vmatprep.subr.bf16.mxu1 %v3741_v57  ;;  %v3573_v61 = vpack.c.bf16 %v2618_v60, %v2617_v58 }
 0x5f5   : > { %3496 = vmatpush3.bf16.msra.mxu0 %v3495_v0  ;;  %3541 = vmatpush3.bf16.msra.mxu1 %v3540_v1  ;;  %v3576_v0 = vpack.c.bf16 %v2620_v63, %v2619_v62  ;;  %v2621_v1 = vld [vmem:[%s4957_s13 + $0x30] sm:$0xff] }
 0x5f6   : > { %3497 = vmatprep.subr.bf16.mxu0 %v3741_v57  ;;  %3542 = vmatprep.subr.bf16.mxu1 %v3741_v57  ;;  %v3579_v3 = vpack.c.bf16 %v2622_v2, %v2621_v1 }
 0x5f9   : > { %3499 = vmatpush3.bf16.msra.mxu0 %v3498_v6  ;;  %3544 = vmatpush3.bf16.msra.mxu1 %v3543_v8 }
 0x5fa   : > { %3500 = vmatprep.subr.bf16.mxu0 %v3741_v57  ;;  %3545 = vmatprep.subr.bf16.mxu1 %v3741_v57 }
 0x5fd   : > { %3502 = vmatpush3.bf16.msra.mxu0 %v3501_v13  ;;  %3547 = vmatpush3.bf16.msra.mxu1 %v3546_v14 }
 0x5fe   : > { %3518 = vmatprep.subr.bf16.mxu0 %v3741_v57  ;;  %3569 = vmatprep.subr.bf16.mxu1 %v3741_v57 }
 0x600   : > { %3128 = vmatmul.mubr.msk.f32.vlgmr.msra.gmra.mrb[14].mxu0 %vm2116_vm13, %v2093_v23  ;;  %3197 = vmatmul.mubr.msk.f32.vlgmr.msra.gmra.mrb[14].mxu1 %vm2116_vm13, %v2435_v24  ;;  %v2623_v24 = vld [vmem:[%s4957_s13 + $0x40] sm:$0xff] }
 0x601   : > { %3520 = vmatpush3.bf16.msra.mxu0 %v3519_v17  ;;  %3173 = vmatprep.mubr.msk.f32.mxu0 %vm3742_vm11, %v3739_v7 }
 0x602   : > { %3521 = vmatprep.subr.bf16.mxu0 %v3741_v57  ;;  %3254 = vmatprep.mubr.msk.f32.mxu1 %vm3742_vm11, %v3739_v7 }
 0x603   : > { %3571 = vmatpush3.bf16.msra.mxu1 %v3570_v59 }
 0x604   : > { %3572 = vmatprep.subr.bf16.mxu1 %v3741_v57 }
 0x605   : > { %3523 = vmatpush3.bf16.msra.mxu0 %v3522_v25  ;;  %v2624_v25 = vld [vmem:[%s4957_s13 + $0x48] sm:$0xff] }
 0x606   : > { %3524 = vmatprep.subr.bf16.mxu0 %v3741_v57  ;;  %v3582_v26 = vpack.c.bf16 %v2624_v25, %v2623_v24 }
 0x607   : > { %3574 = vmatpush3.bf16.msra.mxu1 %v3573_v61 }
 0x608   : > { %3575 = vmatprep.subr.bf16.mxu1 %v3741_v57 }
 0x609   : > { %3526 = vmatpush3.bf16.msra.mxu0 %v3525_v28  ;;  %v2539_v28 = vld [vmem:[%s4956_s12] sm:$0x1] }
 0x60a   : > { %3527 = vmatprep.subr.bf16.mxu0 %v3741_v57 }
 0x60b   : > { %3577 = vmatpush3.bf16.msra.mxu1 %v3576_v0 }
 0x60c   : > { %3578 = vmatprep.subr.bf16.mxu1 %v3741_v57 }
 0x60d   : > { %3529 = vmatpush3.bf16.msra.mxu0 %v3528_v31 }
 0x60e   : > { %3530 = vmatprep.subr.bf16.mxu0 %v3741_v57 }
 0x60f   : > { %3580 = vmatpush3.bf16.msra.mxu1 %v3579_v3 }
 0x610   : > { %3581 = vmatprep.subr.bf16.mxu1 %v3741_v57 }
 0x611   : > { %3532 = vmatpush3.bf16.msra.mxu0 %v3531_v34 }
 0x612   : > { %3548 = vmatprep.subr.bf16.mxu0 %v3741_v57 }
 0x613   : > { %3583 = vmatpush3.bf16.msra.mxu1 %v3582_v26 }
 0x614   : > { %3174 = vmatmul.mubr.msk.f32.vlgmr.msra.gmra.mrb[16].mxu0 %vm2116_vm13, %v2349_v35  ;;  %3252 = vmatprep.subr.mxu1 %v3739_v7 }
 0x615   : > { %3229 = vmatprep.mubr.msk.f32.mxu0 %vm3742_vm11, %v3739_v7  ;;  %3550 = vmatpush3.bf16.msra.mxu0 %v3549_v38 }
 0x616   : > { %3551 = vmatprep.subr.bf16.mxu0 %v3741_v57 }
 0x617   : > { %3253 = vmatpush3.msk.msra.mxu1 %vm1123_vm1, %v2625_v27 }
 0x619   : > { %3553 = vmatpush3.bf16.msra.mxu0 %v3552_v42 }
 0x61a   : > { %3554 = vmatprep.subr.bf16.mxu0 %v3741_v57 }
 0x61d   : > { %3556 = vmatpush3.bf16.msra.mxu0 %v3555_v20 }
 0x61e   : > { %3557 = vmatprep.subr.bf16.mxu0 %v3741_v57 }
 0x621   : > { %3559 = vmatpush3.bf16.msra.mxu0 %v3558_v44 }
 0x622   : > { %3560 = vmatprep.subr.bf16.mxu0 %v3741_v57 }
 0x625   : > { %3562 = vmatpush3.bf16.msra.mxu0 %v3561_v47 }
 0x626   : > { %3563 = vmatprep.subr.bf16.mxu0 %v3741_v57 }
 0x629   : > { %3565 = vmatpush3.bf16.msra.mxu0 %v3564_v50 }
 0x62a   : > { %3566 = vmatprep.subr.bf16.mxu0 %v3741_v57 }
 0x62d   : > { %3568 = vmatpush3.bf16.msra.mxu0 %v3567_v53 }
 0x62e   : > { %3227 = vmatprep.subr.mxu0 %v3739_v7  ;;  %v2626_v7 = vld [vmem:[%s4958_s14] sm:$0x1] }
 0x631   : > { %3228 = vmatpush3.msra.mxu0 %v2538_v54 }
 0x6bf   : > { %v2186_v4 = vpop.f32.mrb[12].mxu0  ;;  %v2344_v5 = vpop.f32.mrb[12].mxu1 }
 0x6c0   : > { %v3106_v6 = vpop.f32.mrb[13].mxu0  ;;  %v3152_v8 = vpop.f32.mrb[13].mxu1 }
 0x6d3   : > { %v2259_v9 = vpop.f32.mrb[14].mxu0  ;;  %v2516_v10 = vpop.f32.mrb[14].mxu1 }
 0x6d4   : > { %v2260_v11 = vadd.f32 %v2259_v9, %v2186_v4  ;;  %v3129_v12 = vpop.f32.mrb[15].mxu0  ;;  %v3198_v13 = vpop.f32.mrb[15].mxu1 }
 0x6d6   : > { %v2348_v14 = vadd.f32 %v2344_v5, %v2260_v11 }
 0x6e7   : > { %v2430_v15 = vpop.f32.mrb[16].mxu0 }
 0x6e8   : > { %v2434_v16 = vadd.f32 %v2430_v15, %v2348_v14  ;;  %v3175_v17 = vpop.f32.mrb[17].mxu0 }
 0x6ea   : > { %v2520_v21 = vadd.f32 %v2516_v10, %v2434_v16 }
 0x6ec   : > { %v2522_v23 = vadd.f32 %v2521_v18, %v2520_v21 }
 0x6ee   : > { %v2523_v57 = vmax.f32 %v2522_v23, 0.0 }
 0x6f0   : > { %3230 = vmatmul.mubr.msk.f32.vlgmr.msra.gmra.mrb[18].mxu0 %vm2540_vm14, %v2523_v57 }
 0x7c3   : > { %v2610_v29 = vpop.f32.mrb[18].mxu0 }
 0x7c4   : > { %v2611_v30 = vadd.f32 %v2610_v29, %v2539_v28  ;;  %v3231_v31 = vpop.f32.mrb[19].mxu0 }
 0x7c6   : > { %v2614_v32 = vmax.f32 %v2611_v30, 0.0 }
 0x7c8   : > { %3255 = vmatmul.mubr.msk.f32.vlgmr.msra.gmra.mrb[16].mxu1 %vm1310_vm6, %v2614_v32 }
 0x89b   : > { %v2699_v33 = vpop.f32.mrb[16].mxu1 }
 0x89c   : > { %v2700_v34 = vadd.f32 %v2699_v33, %v2626_v7  ;;  %v3256_v35 = vpop.f32.mrb[17].mxu1 }
 0x89e   : > { %2704 = vst.msk [vmem:[%s486_s16] sm:$0x1] %vm2703_vm15, %v2700_v34 }
 0x89f   : > { %3688 = shalt.err (!%p3685_p3)
}
 0x8a0   : > { %s3689_s26 = scalar_lea.hbm %s4902_s27, 16  ;;  %s3693_s16 = scalar_lea.hbm %s4959_s15, 32 }
 0x8a1   : > { %p3690_p4 = scmp.ne.s32.totalorder %s4902_s27, %s3689_s26  ;;  %p3694_p9 = scmp.lt.u32.totalorder %s4902_s27, %s4959_s15 }
 0x8a2   : > { %p3695_p10 = scmp.lt.u32.totalorder %s3693_s16, %s3689_s26  ;;  %p3697_p12 = scmp.lt.u32.totalorder %s3689_s26, %s4902_s27 }
 0x8a3   : > { %p3691_p7 = pnand %p3690_p4, %p3862_p5 }
 0x8a4   : > { %p3696_p11 = por %p3695_p10, %p3694_p9 }
 0x8a5   : > { %p3692_p8 = pneg %p3691_p7 }
 0x8a6   : > { %p3698_p13 = por %p3697_p12, %p3696_p11 }
 0x8a8   : > { %p3699_p0 = pnand %p3698_p13, %p3692_p8 }
 0x8aa   : > { %3702 = shalt.err (!%p3699_p0)
}
 0x8ab   : > { %3632 = dma.vmem_to_hbm [thread:$0]  (%p3862_p5), %s4904_s17, 16, %s4902_s27, %s2706_s29  }
 0x8ac PF: > { %s4974_s21 = sld [smem:[#allocation9_spill]]  ;;  %s4975_s22 = sld [smem:[#allocation7_spill]] }
 0x8b2   : > { %p3638_p1 = scmp.ge.s32.totalorder %s4974_s21, 2  ;;  %s2730_s30 = sand.u32 1, %s4975_s22  }
 0x8b3   : > { %s2731_s18 = scalar_lea.sflag [#allocation5], %s2730_s30 }
 0x8b4   : > { %p3635_p2 = pnand %p3638_p1, %p3866_p6 }
 0x8b6   : > { %3720 = dma.done.wait (!%p3635_p2), %s2731_s18, 16  }
 0x8b7   : > { %3722 = vsyncadd (!%p3635_p2), %s2731_s18, 4294967280  ;;  %s4977_s21 = sld [smem:[#allocation10_spill]]  ;;  %s4978_s26 = sld [smem:[#allocation8_spill]] }
 0x8b8   : > { %s4979_s20 = sld [smem:[#allocation11_spill]]  ;;  %s4980_s18 = smov %s3729_s19 }
 0x8bd   : > { %p25_p3 = scmp.ge.s32.totalorder %s4977_s21, 4   ;;  %s4981_s19 = smov %s4978_s26 }
 0x8bf   :  { %27 = sbr.rel (!%p25_p3) target bundleno = 3 (0x3), region = 127 }
 0x8c6   :  { %2735 = vsyncpa [#allocation5], 1 }
 0x8c7   :  { %2737 = vsyncpa [#allocation5 + $0x1], 1 }

</bundles_post_ra>
